<compile_context>
chip_gen: v7x
topology: tpu7x:2x2x1
jax: 0.10.0
libtpu: 0.0.40
codegen_flags: <defaults>
</compile_context>

<pallas_src>
import math

import jax
import jax.numpy as jnp
from jax.experimental import pallas as pl
from jax.experimental.pallas import tpu as pltpu

# ---------------- mini-BERT config (small, consistent with the module) -------
VOCAB = 100          # vocab size (synthetic)
VOCAB_PAD = 128      # word-embedding table padded to a lane-dense 128 rows
TYPE_VOCAB = 2       # token-type vocab (BERT segment ids)
B = 2                # batch
S = 8                # sequence length (<= max_length=128)
BS = B * S
H = 32               # hidden size
NH = 4               # attention heads
DH = H // NH         # head dim
FF = 64              # FFN intermediate size
NLAYERS = 2          # encoder layers
EPS = 1e-12          # BERT LayerNorm eps
DROPOUT_P = 0.1      # eval mode -> identity
LOG2_S = 3           # log2(S), used for in-kernel batch-index compare

assert S == 1 << LOG2_S and S % 8 == 0 and H % NH == 0

# ---------------- packed-parameter layout -------------------------------------
# Embedding slab (f32): rows [0:128] word table (rows >= VOCAB are zero),
# rows [128:144] position table tiled to B*S rows, rows [144:146] token-type.
EMB_POS_OFF = VOCAB_PAD
EMB_TYPE_OFF = VOCAB_PAD + BS
EMB_ROWS = EMB_TYPE_OFF + TYPE_VOCAB

# Small-vector slab (f32, one 128-lane row per vector):
#   row 0 emb_ln_g, row 1 emb_ln_b; per layer li (base = 2 + 8*li):
#   +0 bqkv(96) +1 bo(32) +2 ln1_g +3 ln1_b +4 b1(64) +5 b2(32) +6 ln2_g +7 ln2_b
SVEC_COLS = 128
SVEC_ROWS = 2 + 8 * NLAYERS

# Big-weight slab (bf16), each sub-matrix starts on a 128-lane boundary:
#   [0:96] Wqkv (H,3H)   [128:160] Wo (H,H)   [256:320] W1 (H,FF)   [384:448] W2^T (H,FF)
WQKV_OFF, WO_OFF, W1_OFF, W2T_OFF, WCOLS = 0, 128, 256, 384, 512


# ---------------- in-kernel helpers -------------------------------------------
def _layernorm(x, gamma, beta):
    mu = jnp.mean(x, axis=-1, keepdims=True)
    var = jnp.mean((x - mu) ** 2, axis=-1, keepdims=True)
    return (x - mu) * jax.lax.rsqrt(var + EPS) * gamma + beta


def _gelu(x):
    # TODO(synk): tanh-approximate GELU; PyTorch nn.GELU default is exact erf (~1e-3 rel diff).
    return 0.5 * x * (1.0 + jnp.tanh(0.7978845608028654 * (x + 0.044715 * x * x * x)))


# ---------------- fused encoder kernel (nb = batch elements per block) --------
def make_encoder_kernel(nb):
    nbs = nb * S

    def kernel(ids_ref, tt_ref, mask_ref, emb_ref, svec_ref, w_ref, o_ref):
        # ---- embeddings: word via one-hot matmul (exact f32), type via 2-way select,
        #      positions read pre-tiled ----
        ids = ids_ref[...]                                                  # (nbs, 1) i32
        vocab_iota = jax.lax.broadcasted_iota(jnp.int32, (nbs, VOCAB_PAD), 1)
        onehot = (ids == vocab_iota).astype(jnp.float32)                    # (nbs, 128)
        word_e = jnp.dot(onehot, emb_ref[0:VOCAB_PAD, :],
                         preferred_element_type=jnp.float32)                # (nbs, H)

        tt = tt_ref[...]                                                    # (nbs, 1) i32
        type_e = jnp.where(tt == 0,
                           emb_ref[EMB_TYPE_OFF:EMB_TYPE_OFF + 1, :],
                           emb_ref[EMB_TYPE_OFF + 1:EMB_TYPE_OFF + 2, :])   # (nbs, H)
        pos_e = emb_ref[EMB_POS_OFF:EMB_POS_OFF + nbs, :]                   # (nbs, H)

        x = _layernorm(word_e + type_e + pos_e,
                       svec_ref[0:1, 0:H], svec_ref[1:2, 0:H])              # (nbs, H) f32

        # ---- additive attention bias, built in-kernel from the key mask ----
        key_bias = jnp.where(mask_ref[...] > 0.5, 0.0, -1e9)                # (1, nbs) f32
        if nb == 1:
            bias = key_bias                                                  # broadcasts over rows
        else:
            # kill cross-batch score entries in the flattened (nbs, nbs) matrix
            rb = jax.lax.broadcasted_iota(jnp.int32, (nbs, nbs), 0) >> LOG2_S
            cb = jax.lax.broadcasted_iota(jnp.int32, (nbs, nbs), 1) >> LOG2_S
            bias = jnp.where(rb == cb, key_bias, -1e9)                       # (nbs, nbs)

        scale = 1.0 / math.sqrt(DH)
        dn_t = (((1,), (1,)), ((), ()))   # contract dim 1 of LHS with dim 1 of RHS (no .T)

        for li in range(NLAYERS):
            wl = w_ref[li]                                                   # (H, 512) bf16
            base = 2 + 8 * li

            # ---- multi-head self-attention ----
            qkv = jnp.dot(x.astype(jnp.bfloat16), wl[:, WQKV_OFF:WQKV_OFF + 3 * H],
                          preferred_element_type=jnp.float32)
            qkv = qkv + svec_ref[base:base + 1, 0:3 * H]                     # (nbs, 3H) f32
            qkvb = qkv.astype(jnp.bfloat16)

            ctx_parts = []
            for h in range(NH):
                qh = qkvb[:, h * DH:(h + 1) * DH]
                kh = qkvb[:, H + h * DH:H + (h + 1) * DH]
                vh = qkvb[:, 2 * H + h * DH:2 * H + (h + 1) * DH]
                s = jax.lax.dot_general(qh, kh, dn_t,
                                        preferred_element_type=jnp.float32)  # (nbs, nbs)
                s = s * scale + bias
                s = s - jnp.max(s, axis=-1, keepdims=True)
                p = jnp.exp(s)
                p = p * pl.reciprocal(jnp.sum(p, axis=-1, keepdims=True), approx=True)
                ctx_parts.append(jnp.dot(p.astype(jnp.bfloat16), vh,
                                         preferred_element_type=jnp.float32))  # (nbs, DH)
            ctx = jnp.concatenate(ctx_parts, axis=-1)                         # (nbs, H)

            attn = jnp.dot(ctx.astype(jnp.bfloat16), wl[:, WO_OFF:WO_OFF + H],
                           preferred_element_type=jnp.float32)
            attn = attn + svec_ref[base + 1:base + 2, 0:H]
            x = _layernorm(attn + x,
                           svec_ref[base + 2:base + 3, 0:H],
                           svec_ref[base + 3:base + 4, 0:H])

            # ---- FFN ----
            hdn = jnp.dot(x.astype(jnp.bfloat16), wl[:, W1_OFF:W1_OFF + FF],
                          preferred_element_type=jnp.float32)
            hdn = _gelu(hdn + svec_ref[base + 4:base + 5, 0:FF])
            y = jax.lax.dot_general(hdn.astype(jnp.bfloat16), wl[:, W2T_OFF:W2T_OFF + FF],
                                    dn_t, preferred_element_type=jnp.float32)
            y = y + svec_ref[base + 5:base + 6, 0:H]
            x = _layernorm(y + x,
                           svec_ref[base + 6:base + 7, 0:H],
                           svec_ref[base + 7:base + 8, 0:H])

        # full activation out; CLS slicing happens in the wrapper (no masked stores here)
        o_ref[...] = x

    return kernel


# ---------------- deterministic parameter init (packed slabs) -----------------
def init_params(key):
    def nrm(k, shape, scale=0.02):
        return scale * jax.random.normal(k, shape, dtype=jnp.float32)

    kw, kp, kt, kl = jax.random.split(key, 4)

    # embedding slab (f32); word rows >= VOCAB are zero so clipped/OOB ids are harmless
    word = jnp.zeros((VOCAB_PAD, H), jnp.float32).at[:VOCAB].set(nrm(kw, (VOCAB, H)))
    pos = nrm(kp, (S, H))
    typ = nrm(kt, (TYPE_VOCAB, H))
    emb = jnp.concatenate([word, jnp.tile(pos, (B, 1)), typ], axis=0)      # (146, H)

    # small-vector slab (f32, 128-lane rows)
    def padrow(v):
        return jnp.pad(v, (0, SVEC_COLS - v.shape[0]))
    ones_h = padrow(jnp.ones((H,), jnp.float32))
    zeros_h = padrow(jnp.zeros((H,), jnp.float32))
    zeros_3h = padrow(jnp.zeros((3 * H,), jnp.float32))
    zeros_ff = padrow(jnp.zeros((FF,), jnp.float32))
    rows = [ones_h, zeros_h]                                                # emb LN gamma/beta
    for _ in range(NLAYERS):
        rows += [zeros_3h, zeros_h, ones_h, zeros_h,                        # bqkv, bo, ln1_g, ln1_b
                 zeros_ff, zeros_h, ones_h, zeros_h]                        # b1, b2, ln2_g, ln2_b
    svec = jnp.stack(rows)                                                  # (18, 128)

    # big-weight slab (bf16), 128-lane aligned sub-matrices
    layer_keys = jax.random.split(kl, NLAYERS)
    wl = []
    for li in range(NLAYERS):
        lk = jax.random.split(layer_keys[li], 4)
        row = jnp.zeros((H, WCOLS), jnp.float32)
        row = row.at[:, WQKV_OFF:WQKV_OFF + 3 * H].set(nrm(lk[0], (H, 3 * H)))
        row = row.at[:, WO_OFF:WO_OFF + H].set(nrm(lk[1], (H, H)))
        row = row.at[:, W1_OFF:W1_OFF + FF].set(nrm(lk[2], (H, FF)))
        row = row.at[:, W2T_OFF:W2T_OFF + FF].set(nrm(lk[3], (FF, H)).T)
        wl.append(row)
    w = jnp.stack(wl).astype(jnp.bfloat16)                                  # (L, H, 512)

    return {"emb": emb, "svec": svec, "w": w}


# ---------------- generation gating: 2 TensorCores/chip only on v7x -----------
def _tensorcores_per_chip() -> int:
    try:
        kind = jax.devices()[0].device_kind.lower()
        if "v7" in kind:
            return 2
    except Exception:
        return 1
    return 1


USE_BATCH_GRID = (_tensorcores_per_chip() >= 2) and (B >= 2)


# ---------------- full TextEncoder forward ------------------------------------
@jax.jit
def text_encoder_forward(params, input_ids, attention_mask, token_type_ids):
    ids = jnp.clip(input_ids.astype(jnp.int32), 0, VOCAB - 1)
    tt = jnp.clip(token_type_ids.astype(jnp.int32), 0, TYPE_VOCAB - 1)
    mask = attention_mask.astype(jnp.float32)

    if USE_BATCH_GRID:
        # v7x: one batch element per grid step, sharded across the 2 TensorCores.
        out = pl.pallas_call(
            make_encoder_kernel(1),
            out_shape=jax.ShapeDtypeStruct((BS, H), jnp.float32),
            grid_spec=pltpu.PrefetchScalarGridSpec(
                num_scalar_prefetch=0,
                grid=(B,),
                in_specs=[
                    pl.BlockSpec((pl.Squeezed(), S, 1), lambda b: (b, 0, 0)),   # ids
                    pl.BlockSpec((pl.Squeezed(), S, 1), lambda b: (b, 0, 0)),   # token types
                    pl.BlockSpec((pl.Squeezed(), 1, S), lambda b: (b, 0, 0)),   # key mask
                    pl.BlockSpec((EMB_ROWS, H), lambda b: (0, 0)),              # emb slab
                    pl.BlockSpec((SVEC_ROWS, SVEC_COLS), lambda b: (0, 0)),     # small vecs
                    pl.BlockSpec((NLAYERS, H, WCOLS), lambda b: (0, 0, 0)),     # weight slab
                ],
                out_specs=pl.BlockSpec((S, H), lambda b: (b, 0)),
            ),
            compiler_params=pltpu.CompilerParams(dimension_semantics=("parallel",)),
        )(ids.reshape(B, S, 1), tt.reshape(B, S, 1), mask.reshape(B, 1, S),
          params["emb"], params["svec"], params["w"])
    else:
        # v5e/v6e (single TensorCore): one grid-less fused invocation; cross-batch
        # score entries are masked by the in-kernel additive bias.
        out = pl.pallas_call(
            make_encoder_kernel(B),
            out_shape=jax.ShapeDtypeStruct((BS, H), jnp.float32),
        )(ids.reshape(BS, 1), tt.reshape(BS, 1), mask.reshape(1, BS),
          params["emb"], params["svec"], params["w"])

    # CLS pooling + self.dropout(embeddings): identity in eval mode.
    # TODO(synk): training-mode dropout (p=0.1) not applied; eval semantics used.
    return out.reshape(B, S, H)[:, 0, :]


if __name__ == "__main__":
    key = jax.random.PRNGKey(0)
    pkey, ikey = jax.random.split(key)
    params = init_params(pkey)

    input_ids = jax.random.randint(ikey, (B, S), 0, VOCAB, dtype=jnp.int32)
    attention_mask = jnp.array(
        [[1, 1, 1, 1, 1, 1, 1, 1],
         [1, 1, 1, 1, 1, 1, 0, 0]], dtype=jnp.int32)                        # second row padded
    token_type_ids = jnp.zeros((B, S), dtype=jnp.int32)

    out = text_encoder_forward(params, input_ids, attention_mask, token_type_ids)
    out = jax.block_until_ready(out)
    assert out.shape == (B, H) and out.dtype == jnp.float32
    assert bool(jnp.all(jnp.isfinite(out)))
    print("KERNEL_OK")
</pallas_src>

<mosaic_0001>
module attributes {stable_mosaic.version = 11 : i64} {
  func.func @kernel(%arg0: memref<16x1xi32, #tpu.memory_space<vmem>>, %arg1: memref<16x1xi32, #tpu.memory_space<vmem>>, %arg2: memref<1x16xf32, #tpu.memory_space<vmem>>, %arg3: memref<146x32xf32, #tpu.memory_space<vmem>>, %arg4: memref<18x128xf32, #tpu.memory_space<vmem>>, %arg5: memref<2x32x512xbf16, #tpu.memory_space<vmem>>, %arg6: memref<16x32xf32, #tpu.memory_space<vmem>>) attributes {dimension_semantics = [], scalar_prefetch = 0 : i64, scratch_operands = 0 : i64, tpu.core_type = #tpu.core_type<tc>} {
    %c0 = arith.constant 0 : index
    %c0_0 = arith.constant 0 : index
    %0 = vector.load %arg0[%c0, %c0_0] : memref<16x1xi32, #tpu.memory_space<vmem>>, vector<16x1xi32>
    %1 = tpu.iota {dimensions = array<i32: 1>} : vector<16x128xi32>
    %2 = vector.broadcast %0 : vector<16x1xi32> to vector<16x128xi32>
    %3 = arith.cmpi eq, %2, %1 : vector<16x128xi32>
    %4 = arith.extui %3 : vector<16x128xi1> to vector<16x128xi32>
    %5 = arith.sitofp %4 : vector<16x128xi32> to vector<16x128xf32>
    %c0_1 = arith.constant 0 : index
    %c0_2 = arith.constant 0 : index
    %6 = vector.load %arg3[%c0_1, %c0_2] : memref<146x32xf32, #tpu.memory_space<vmem>>, vector<128x32xf32>
    %cst = arith.constant dense<0.000000e+00> : vector<16x32xf32>
    %7 = tpu.matmul %5, %6, %cst {dimension_numbers = #tpu.dot_dimension_numbers<[1], [0], [0], [1], [0, 0, 1, 1], [], []>} : vector<16x128xf32>, vector<128x32xf32>, vector<16x32xf32> -> vector<16x32xf32>
    %c0_3 = arith.constant 0 : index
    %c0_4 = arith.constant 0 : index
    %8 = vector.load %arg1[%c0_3, %c0_4] : memref<16x1xi32, #tpu.memory_space<vmem>>, vector<16x1xi32>
    %c0_i32 = arith.constant 0 : i32
    %9 = vector.broadcast %c0_i32 : i32 to vector<16x1xi32>
    %10 = arith.cmpi eq, %8, %9 : vector<16x1xi32>
    %c144 = arith.constant 144 : index
    %c0_5 = arith.constant 0 : index
    %11 = vector.load %arg3[%c144, %c0_5] : memref<146x32xf32, #tpu.memory_space<vmem>>, vector<1x32xf32>
    %c145 = arith.constant 145 : index
    %c0_6 = arith.constant 0 : index
    %12 = vector.load %arg3[%c145, %c0_6] : memref<146x32xf32, #tpu.memory_space<vmem>>, vector<1x32xf32>
    %13 = vector.shape_cast %10 : vector<16x1xi1> to vector<16x1xi1>
    %14 = vector.broadcast %13 : vector<16x1xi1> to vector<16x32xi1>
    %15 = vector.shape_cast %11 : vector<1x32xf32> to vector<1x32xf32>
    %16 = vector.broadcast %15 : vector<1x32xf32> to vector<16x32xf32>
    %17 = vector.shape_cast %12 : vector<1x32xf32> to vector<1x32xf32>
    %18 = vector.broadcast %17 : vector<1x32xf32> to vector<16x32xf32>
    %19 = arith.select %14, %16, %18 : vector<16x32xi1>, vector<16x32xf32>
    %c128 = arith.constant 128 : index
    %c0_7 = arith.constant 0 : index
    %20 = vector.load %arg3[%c128, %c0_7] : memref<146x32xf32, #tpu.memory_space<vmem>>, vector<16x32xf32>
    %21 = arith.addf %7, %19 : vector<16x32xf32>
    %22 = arith.addf %21, %20 : vector<16x32xf32>
    %c0_8 = arith.constant 0 : index
    %c0_9 = arith.constant 0 : index
    %23 = vector.load %arg4[%c0_8, %c0_9] : memref<18x128xf32, #tpu.memory_space<vmem>>, vector<1x32xf32>
    %c1 = arith.constant 1 : index
    %c0_10 = arith.constant 0 : index
    %24 = vector.load %arg4[%c1, %c0_10] : memref<18x128xf32, #tpu.memory_space<vmem>>, vector<1x32xf32>
    %cst_11 = arith.constant dense<0.000000e+00> : vector<16xf32>
    %25 = vector.multi_reduction <add>, %22, %cst_11 [1] : vector<16x32xf32> to vector<16xf32>
    %26 = vector.shape_cast %25 : vector<16xf32> to vector<16x1xf32>
    %cst_12 = arith.constant 3.200000e+01 : f32
    %27 = vector.broadcast %cst_12 : f32 to vector<16x1xf32>
    %28 = arith.divf %26, %27 : vector<16x1xf32>
    %29 = vector.broadcast %28 : vector<16x1xf32> to vector<16x32xf32>
    %30 = arith.subf %22, %29 : vector<16x32xf32>
    %31 = arith.mulf %30, %30 : vector<16x32xf32>
    %cst_13 = arith.constant dense<0.000000e+00> : vector<16xf32>
    %32 = vector.multi_reduction <add>, %31, %cst_13 [1] : vector<16x32xf32> to vector<16xf32>
    %33 = vector.shape_cast %32 : vector<16xf32> to vector<16x1xf32>
    %cst_14 = arith.constant 3.200000e+01 : f32
    %34 = vector.broadcast %cst_14 : f32 to vector<16x1xf32>
    %35 = arith.divf %33, %34 : vector<16x1xf32>
    %36 = vector.broadcast %28 : vector<16x1xf32> to vector<16x32xf32>
    %37 = arith.subf %22, %36 : vector<16x32xf32>
    %cst_15 = arith.constant 9.99999996E-13 : f32
    %38 = vector.broadcast %cst_15 : f32 to vector<16x1xf32>
    %39 = arith.addf %35, %38 : vector<16x1xf32>
    %40 = math.rsqrt %39 : vector<16x1xf32>
    %41 = vector.broadcast %40 : vector<16x1xf32> to vector<16x32xf32>
    %42 = arith.mulf %37, %41 : vector<16x32xf32>
    %43 = vector.broadcast %23 : vector<1x32xf32> to vector<16x32xf32>
    %44 = arith.mulf %42, %43 : vector<16x32xf32>
    %45 = vector.broadcast %24 : vector<1x32xf32> to vector<16x32xf32>
    %46 = arith.addf %44, %45 : vector<16x32xf32>
    %c0_16 = arith.constant 0 : index
    %c0_17 = arith.constant 0 : index
    %47 = vector.load %arg2[%c0_16, %c0_17] : memref<1x16xf32, #tpu.memory_space<vmem>>, vector<1x16xf32>
    %cst_18 = arith.constant 5.000000e-01 : f32
    %48 = vector.broadcast %cst_18 : f32 to vector<1x16xf32>
    %49 = arith.cmpf ogt, %47, %48 : vector<1x16xf32>
    %cst_19 = arith.constant 0.000000e+00 : f32
    %cst_20 = arith.constant -1.000000e+09 : f32
    %50 = vector.broadcast %cst_19 : f32 to vector<1x16xf32>
    %51 = vector.broadcast %cst_20 : f32 to vector<1x16xf32>
    %52 = arith.select %49, %50, %51 : vector<1x16xi1>, vector<1x16xf32>
    %53 = tpu.iota {dimensions = array<i32: 0>} : vector<16x16xi32>
    %c3_i32 = arith.constant 3 : i32
    %54 = vector.broadcast %c3_i32 : i32 to vector<16x16xi32>
    %55 = arith.shrsi %53, %54 : vector<16x16xi32>
    %56 = tpu.iota {dimensions = array<i32: 1>} : vector<16x16xi32>
    %c3_i32_21 = arith.constant 3 : i32
    %57 = vector.broadcast %c3_i32_21 : i32 to vector<16x16xi32>
    %58 = arith.shrsi %56, %57 : vector<16x16xi32>
    %59 = arith.cmpi eq, %55, %58 : vector<16x16xi32>
    %cst_22 = arith.constant -1.000000e+09 : f32
    %60 = vector.shape_cast %52 : vector<1x16xf32> to vector<1x16xf32>
    %61 = vector.broadcast %60 : vector<1x16xf32> to vector<16x16xf32>
    %62 = vector.broadcast %cst_22 : f32 to vector<16x16xf32>
    %63 = arith.select %59, %61, %62 : vector<16x16xi1>, vector<16x16xf32>
    %c0_23 = arith.constant 0 : index
    %c0_24 = arith.constant 0 : index
    %c0_25 = arith.constant 0 : index
    %64 = vector.load %arg5[%c0_23, %c0_24, %c0_25] : memref<2x32x512xbf16, #tpu.memory_space<vmem>>, vector<1x32x512xbf16>
    %65 = vector.shape_cast %64 : vector<1x32x512xbf16> to vector<32x512xbf16>
    %66 = arith.truncf %46 : vector<16x32xf32> to vector<16x32xbf16>
    %67 = vector.extract_strided_slice %65 {offsets = [0, 0], sizes = [32, 96], strides = [1, 1]} : vector<32x512xbf16> to vector<32x96xbf16>
    %cst_26 = arith.constant dense<0.000000e+00> : vector<16x96xf32>
    %68 = tpu.matmul %66, %67, %cst_26 {dimension_numbers = #tpu.dot_dimension_numbers<[1], [0], [0], [1], [0, 0, 1, 1], [], []>} : vector<16x32xbf16>, vector<32x96xbf16>, vector<16x96xf32> -> vector<16x96xf32>
    %c2 = arith.constant 2 : index
    %c0_27 = arith.constant 0 : index
    %69 = vector.load %arg4[%c2, %c0_27] : memref<18x128xf32, #tpu.memory_space<vmem>>, vector<1x96xf32>
    %70 = vector.broadcast %69 : vector<1x96xf32> to vector<16x96xf32>
    %71 = arith.addf %68, %70 : vector<16x96xf32>
    %72 = arith.truncf %71 : vector<16x96xf32> to vector<16x96xbf16>
    %73 = vector.extract_strided_slice %72 {offsets = [0, 0], sizes = [16, 8], strides = [1, 1]} : vector<16x96xbf16> to vector<16x8xbf16>
    %74 = vector.extract_strided_slice %72 {offsets = [0, 32], sizes = [16, 8], strides = [1, 1]} : vector<16x96xbf16> to vector<16x8xbf16>
    %75 = vector.extract_strided_slice %72 {offsets = [0, 64], sizes = [16, 8], strides = [1, 1]} : vector<16x96xbf16> to vector<16x8xbf16>
    %cst_28 = arith.constant dense<0.000000e+00> : vector<16x16xf32>
    %76 = tpu.matmul %73, %74, %cst_28 {dimension_numbers = #tpu.dot_dimension_numbers<[1], [1], [0], [0], [0, 0, 1, 0], [], []>} : vector<16x8xbf16>, vector<16x8xbf16>, vector<16x16xf32> -> vector<16x16xf32>
    %cst_29 = arith.constant 0.353553385 : f32
    %77 = vector.broadcast %cst_29 : f32 to vector<16x16xf32>
    %78 = arith.mulf %76, %77 : vector<16x16xf32>
    %79 = arith.addf %78, %63 : vector<16x16xf32>
    %cst_30 = arith.constant dense<0xFF800000> : vector<16xf32>
    %80 = vector.multi_reduction <maximumf>, %79, %cst_30 [1] : vector<16x16xf32> to vector<16xf32>
    %81 = vector.shape_cast %80 : vector<16xf32> to vector<16x1xf32>
    %82 = vector.broadcast %81 : vector<16x1xf32> to vector<16x16xf32>
    %83 = arith.subf %79, %82 : vector<16x16xf32>
    %84 = math.exp %83 : vector<16x16xf32>
    %cst_31 = arith.constant dense<0.000000e+00> : vector<16xf32>
    %85 = vector.multi_reduction <add>, %84, %cst_31 [1] : vector<16x16xf32> to vector<16xf32>
    %86 = vector.shape_cast %85 : vector<16xf32> to vector<16x1xf32>
    %87 = tpu.reciprocal %86 {approx = true} : vector<16x1xf32> -> vector<16x1xf32>
    %88 = vector.broadcast %87 : vector<16x1xf32> to vector<16x16xf32>
    %89 = arith.mulf %84, %88 : vector<16x16xf32>
    %90 = arith.truncf %89 : vector<16x16xf32> to vector<16x16xbf16>
    %cst_32 = arith.constant dense<0.000000e+00> : vector<16x8xf32>
    %91 = tpu.matmul %90, %75, %cst_32 {dimension_numbers = #tpu.dot_dimension_numbers<[1], [0], [0], [1], [0, 0, 1, 1], [], []>} : vector<16x16xbf16>, vector<16x8xbf16>, vector<16x8xf32> -> vector<16x8xf32>
    %92 = vector.extract_strided_slice %72 {offsets = [0, 8], sizes = [16, 8], strides = [1, 1]} : vector<16x96xbf16> to vector<16x8xbf16>
    %93 = vector.extract_strided_slice %72 {offsets = [0, 40], sizes = [16, 8], strides = [1, 1]} : vector<16x96xbf16> to vector<16x8xbf16>
    %94 = vector.extract_strided_slice %72 {offsets = [0, 72], sizes = [16, 8], strides = [1, 1]} : vector<16x96xbf16> to vector<16x8xbf16>
    %cst_33 = arith.constant dense<0.000000e+00> : vector<16x16xf32>
    %95 = tpu.matmul %92, %93, %cst_33 {dimension_numbers = #tpu.dot_dimension_numbers<[1], [1], [0], [0], [0, 0, 1, 0], [], []>} : vector<16x8xbf16>, vector<16x8xbf16>, vector<16x16xf32> -> vector<16x16xf32>
    %cst_34 = arith.constant 0.353553385 : f32
    %96 = vector.broadcast %cst_34 : f32 to vector<16x16xf32>
    %97 = arith.mulf %95, %96 : vector<16x16xf32>
    %98 = arith.addf %97, %63 : vector<16x16xf32>
    %cst_35 = arith.constant dense<0xFF800000> : vector<16xf32>
    %99 = vector.multi_reduction <maximumf>, %98, %cst_35 [1] : vector<16x16xf32> to vector<16xf32>
    %100 = vector.shape_cast %99 : vector<16xf32> to vector<16x1xf32>
    %101 = vector.broadcast %100 : vector<16x1xf32> to vector<16x16xf32>
    %102 = arith.subf %98, %101 : vector<16x16xf32>
    %103 = math.exp %102 : vector<16x16xf32>
    %cst_36 = arith.constant dense<0.000000e+00> : vector<16xf32>
    %104 = vector.multi_reduction <add>, %103, %cst_36 [1] : vector<16x16xf32> to vector<16xf32>
    %105 = vector.shape_cast %104 : vector<16xf32> to vector<16x1xf32>
    %106 = tpu.reciprocal %105 {approx = true} : vector<16x1xf32> -> vector<16x1xf32>
    %107 = vector.broadcast %106 : vector<16x1xf32> to vector<16x16xf32>
    %108 = arith.mulf %103, %107 : vector<16x16xf32>
    %109 = arith.truncf %108 : vector<16x16xf32> to vector<16x16xbf16>
    %cst_37 = arith.constant dense<0.000000e+00> : vector<16x8xf32>
    %110 = tpu.matmul %109, %94, %cst_37 {dimension_numbers = #tpu.dot_dimension_numbers<[1], [0], [0], [1], [0, 0, 1, 1], [], []>} : vector<16x16xbf16>, vector<16x8xbf16>, vector<16x8xf32> -> vector<16x8xf32>
    %111 = vector.extract_strided_slice %72 {offsets = [0, 16], sizes = [16, 8], strides = [1, 1]} : vector<16x96xbf16> to vector<16x8xbf16>
    %112 = vector.extract_strided_slice %72 {offsets = [0, 48], sizes = [16, 8], strides = [1, 1]} : vector<16x96xbf16> to vector<16x8xbf16>
    %113 = vector.extract_strided_slice %72 {offsets = [0, 80], sizes = [16, 8], strides = [1, 1]} : vector<16x96xbf16> to vector<16x8xbf16>
    %cst_38 = arith.constant dense<0.000000e+00> : vector<16x16xf32>
    %114 = tpu.matmul %111, %112, %cst_38 {dimension_numbers = #tpu.dot_dimension_numbers<[1], [1], [0], [0], [0, 0, 1, 0], [], []>} : vector<16x8xbf16>, vector<16x8xbf16>, vector<16x16xf32> -> vector<16x16xf32>
    %cst_39 = arith.constant 0.353553385 : f32
    %115 = vector.broadcast %cst_39 : f32 to vector<16x16xf32>
    %116 = arith.mulf %114, %115 : vector<16x16xf32>
    %117 = arith.addf %116, %63 : vector<16x16xf32>
    %cst_40 = arith.constant dense<0xFF800000> : vector<16xf32>
    %118 = vector.multi_reduction <maximumf>, %117, %cst_40 [1] : vector<16x16xf32> to vector<16xf32>
    %119 = vector.shape_cast %118 : vector<16xf32> to vector<16x1xf32>
    %120 = vector.broadcast %119 : vector<16x1xf32> to vector<16x16xf32>
    %121 = arith.subf %117, %120 : vector<16x16xf32>
    %122 = math.exp %121 : vector<16x16xf32>
    %cst_41 = arith.constant dense<0.000000e+00> : vector<16xf32>
    %123 = vector.multi_reduction <add>, %122, %cst_41 [1] : vector<16x16xf32> to vector<16xf32>
    %124 = vector.shape_cast %123 : vector<16xf32> to vector<16x1xf32>
    %125 = tpu.reciprocal %124 {approx = true} : vector<16x1xf32> -> vector<16x1xf32>
    %126 = vector.broadcast %125 : vector<16x1xf32> to vector<16x16xf32>
    %127 = arith.mulf %122, %126 : vector<16x16xf32>
    %128 = arith.truncf %127 : vector<16x16xf32> to vector<16x16xbf16>
    %cst_42 = arith.constant dense<0.000000e+00> : vector<16x8xf32>
    %129 = tpu.matmul %128, %113, %cst_42 {dimension_numbers = #tpu.dot_dimension_numbers<[1], [0], [0], [1], [0, 0, 1, 1], [], []>} : vector<16x16xbf16>, vector<16x8xbf16>, vector<16x8xf32> -> vector<16x8xf32>
    %130 = vector.extract_strided_slice %72 {offsets = [0, 24], sizes = [16, 8], strides = [1, 1]} : vector<16x96xbf16> to vector<16x8xbf16>
    %131 = vector.extract_strided_slice %72 {offsets = [0, 56], sizes = [16, 8], strides = [1, 1]} : vector<16x96xbf16> to vector<16x8xbf16>
    %132 = vector.extract_strided_slice %72 {offsets = [0, 88], sizes = [16, 8], strides = [1, 1]} : vector<16x96xbf16> to vector<16x8xbf16>
    %cst_43 = arith.constant dense<0.000000e+00> : vector<16x16xf32>
    %133 = tpu.matmul %130, %131, %cst_43 {dimension_numbers = #tpu.dot_dimension_numbers<[1], [1], [0], [0], [0, 0, 1, 0], [], []>} : vector<16x8xbf16>, vector<16x8xbf16>, vector<16x16xf32> -> vector<16x16xf32>
    %cst_44 = arith.constant 0.353553385 : f32
    %134 = vector.broadcast %cst_44 : f32 to vector<16x16xf32>
    %135 = arith.mulf %133, %134 : vector<16x16xf32>
    %136 = arith.addf %135, %63 : vector<16x16xf32>
    %cst_45 = arith.constant dense<0xFF800000> : vector<16xf32>
    %137 = vector.multi_reduction <maximumf>, %136, %cst_45 [1] : vector<16x16xf32> to vector<16xf32>
    %138 = vector.shape_cast %137 : vector<16xf32> to vector<16x1xf32>
    %139 = vector.broadcast %138 : vector<16x1xf32> to vector<16x16xf32>
    %140 = arith.subf %136, %139 : vector<16x16xf32>
    %141 = math.exp %140 : vector<16x16xf32>
    %cst_46 = arith.constant dense<0.000000e+00> : vector<16xf32>
    %142 = vector.multi_reduction <add>, %141, %cst_46 [1] : vector<16x16xf32> to vector<16xf32>
    %143 = vector.shape_cast %142 : vector<16xf32> to vector<16x1xf32>
    %144 = tpu.reciprocal %143 {approx = true} : vector<16x1xf32> -> vector<16x1xf32>
    %145 = vector.broadcast %144 : vector<16x1xf32> to vector<16x16xf32>
    %146 = arith.mulf %141, %145 : vector<16x16xf32>
    %147 = arith.truncf %146 : vector<16x16xf32> to vector<16x16xbf16>
    %cst_47 = arith.constant dense<0.000000e+00> : vector<16x8xf32>
    %148 = tpu.matmul %147, %132, %cst_47 {dimension_numbers = #tpu.dot_dimension_numbers<[1], [0], [0], [1], [0, 0, 1, 1], [], []>} : vector<16x16xbf16>, vector<16x8xbf16>, vector<16x8xf32> -> vector<16x8xf32>
    %149 = tpu.concatenate %91, %110, %129, %148 in 1 : vector<16x8xf32>, vector<16x8xf32>, vector<16x8xf32>, vector<16x8xf32> -> vector<16x32xf32>
    %150 = arith.truncf %149 : vector<16x32xf32> to vector<16x32xbf16>
    %151 = vector.extract_strided_slice %65 {offsets = [0, 128], sizes = [32, 32], strides = [1, 1]} : vector<32x512xbf16> to vector<32x32xbf16>
    %cst_48 = arith.constant dense<0.000000e+00> : vector<16x32xf32>
    %152 = tpu.matmul %150, %151, %cst_48 {dimension_numbers = #tpu.dot_dimension_numbers<[1], [0], [0], [1], [0, 0, 1, 1], [], []>} : vector<16x32xbf16>, vector<32x32xbf16>, vector<16x32xf32> -> vector<16x32xf32>
    %c3 = arith.constant 3 : index
    %c0_49 = arith.constant 0 : index
    %153 = vector.load %arg4[%c3, %c0_49] : memref<18x128xf32, #tpu.memory_space<vmem>>, vector<1x32xf32>
    %154 = vector.broadcast %153 : vector<1x32xf32> to vector<16x32xf32>
    %155 = arith.addf %152, %154 : vector<16x32xf32>
    %156 = arith.addf %155, %46 : vector<16x32xf32>
    %c4 = arith.constant 4 : index
    %c0_50 = arith.constant 0 : index
    %157 = vector.load %arg4[%c4, %c0_50] : memref<18x128xf32, #tpu.memory_space<vmem>>, vector<1x32xf32>
    %c5 = arith.constant 5 : index
    %c0_51 = arith.constant 0 : index
    %158 = vector.load %arg4[%c5, %c0_51] : memref<18x128xf32, #tpu.memory_space<vmem>>, vector<1x32xf32>
    %cst_52 = arith.constant dense<0.000000e+00> : vector<16xf32>
    %159 = vector.multi_reduction <add>, %156, %cst_52 [1] : vector<16x32xf32> to vector<16xf32>
    %160 = vector.shape_cast %159 : vector<16xf32> to vector<16x1xf32>
    %cst_53 = arith.constant 3.200000e+01 : f32
    %161 = vector.broadcast %cst_53 : f32 to vector<16x1xf32>
    %162 = arith.divf %160, %161 : vector<16x1xf32>
    %163 = vector.broadcast %162 : vector<16x1xf32> to vector<16x32xf32>
    %164 = arith.subf %156, %163 : vector<16x32xf32>
    %165 = arith.mulf %164, %164 : vector<16x32xf32>
    %cst_54 = arith.constant dense<0.000000e+00> : vector<16xf32>
    %166 = vector.multi_reduction <add>, %165, %cst_54 [1] : vector<16x32xf32> to vector<16xf32>
    %167 = vector.shape_cast %166 : vector<16xf32> to vector<16x1xf32>
    %cst_55 = arith.constant 3.200000e+01 : f32
    %168 = vector.broadcast %cst_55 : f32 to vector<16x1xf32>
    %169 = arith.divf %167, %168 : vector<16x1xf32>
    %170 = vector.broadcast %162 : vector<16x1xf32> to vector<16x32xf32>
    %171 = arith.subf %156, %170 : vector<16x32xf32>
    %cst_56 = arith.constant 9.99999996E-13 : f32
    %172 = vector.broadcast %cst_56 : f32 to vector<16x1xf32>
    %173 = arith.addf %169, %172 : vector<16x1xf32>
    %174 = math.rsqrt %173 : vector<16x1xf32>
    %175 = vector.broadcast %174 : vector<16x1xf32> to vector<16x32xf32>
    %176 = arith.mulf %171, %175 : vector<16x32xf32>
    %177 = vector.broadcast %157 : vector<1x32xf32> to vector<16x32xf32>
    %178 = arith.mulf %176, %177 : vector<16x32xf32>
    %179 = vector.broadcast %158 : vector<1x32xf32> to vector<16x32xf32>
    %180 = arith.addf %178, %179 : vector<16x32xf32>
    %181 = arith.truncf %180 : vector<16x32xf32> to vector<16x32xbf16>
    %182 = vector.extract_strided_slice %65 {offsets = [0, 256], sizes = [32, 64], strides = [1, 1]} : vector<32x512xbf16> to vector<32x64xbf16>
    %cst_57 = arith.constant dense<0.000000e+00> : vector<16x64xf32>
    %183 = tpu.matmul %181, %182, %cst_57 {dimension_numbers = #tpu.dot_dimension_numbers<[1], [0], [0], [1], [0, 0, 1, 1], [], []>} : vector<16x32xbf16>, vector<32x64xbf16>, vector<16x64xf32> -> vector<16x64xf32>
    %c6 = arith.constant 6 : index
    %c0_58 = arith.constant 0 : index
    %184 = vector.load %arg4[%c6, %c0_58] : memref<18x128xf32, #tpu.memory_space<vmem>>, vector<1x64xf32>
    %185 = vector.broadcast %184 : vector<1x64xf32> to vector<16x64xf32>
    %186 = arith.addf %183, %185 : vector<16x64xf32>
    %cst_59 = arith.constant 5.000000e-01 : f32
    %187 = vector.broadcast %cst_59 : f32 to vector<16x64xf32>
    %188 = arith.mulf %187, %186 : vector<16x64xf32>
    %cst_60 = arith.constant 4.471500e-02 : f32
    %189 = vector.broadcast %cst_60 : f32 to vector<16x64xf32>
    %190 = arith.mulf %189, %186 : vector<16x64xf32>
    %191 = arith.mulf %190, %186 : vector<16x64xf32>
    %192 = arith.mulf %191, %186 : vector<16x64xf32>
    %193 = arith.addf %186, %192 : vector<16x64xf32>
    %cst_61 = arith.constant 0.797884583 : f32
    %194 = vector.broadcast %cst_61 : f32 to vector<16x64xf32>
    %195 = arith.mulf %194, %193 : vector<16x64xf32>
    %196 = math.tanh %195 : vector<16x64xf32>
    %cst_62 = arith.constant 1.000000e+00 : f32
    %197 = vector.broadcast %cst_62 : f32 to vector<16x64xf32>
    %198 = arith.addf %197, %196 : vector<16x64xf32>
    %199 = arith.mulf %188, %198 : vector<16x64xf32>
    %200 = arith.truncf %199 : vector<16x64xf32> to vector<16x64xbf16>
    %201 = vector.extract_strided_slice %65 {offsets = [0, 384], sizes = [32, 64], strides = [1, 1]} : vector<32x512xbf16> to vector<32x64xbf16>
    %cst_63 = arith.constant dense<0.000000e+00> : vector<16x32xf32>
    %202 = tpu.matmul %200, %201, %cst_63 {dimension_numbers = #tpu.dot_dimension_numbers<[1], [1], [0], [0], [0, 0, 1, 0], [], []>} : vector<16x64xbf16>, vector<32x64xbf16>, vector<16x32xf32> -> vector<16x32xf32>
    %c7 = arith.constant 7 : index
    %c0_64 = arith.constant 0 : index
    %203 = vector.load %arg4[%c7, %c0_64] : memref<18x128xf32, #tpu.memory_space<vmem>>, vector<1x32xf32>
    %204 = vector.broadcast %203 : vector<1x32xf32> to vector<16x32xf32>
    %205 = arith.addf %202, %204 : vector<16x32xf32>
    %206 = arith.addf %205, %180 : vector<16x32xf32>
    %c8 = arith.constant 8 : index
    %c0_65 = arith.constant 0 : index
    %207 = vector.load %arg4[%c8, %c0_65] : memref<18x128xf32, #tpu.memory_space<vmem>>, vector<1x32xf32>
    %c9 = arith.constant 9 : index
    %c0_66 = arith.constant 0 : index
    %208 = vector.load %arg4[%c9, %c0_66] : memref<18x128xf32, #tpu.memory_space<vmem>>, vector<1x32xf32>
    %cst_67 = arith.constant dense<0.000000e+00> : vector<16xf32>
    %209 = vector.multi_reduction <add>, %206, %cst_67 [1] : vector<16x32xf32> to vector<16xf32>
    %210 = vector.shape_cast %209 : vector<16xf32> to vector<16x1xf32>
    %cst_68 = arith.constant 3.200000e+01 : f32
    %211 = vector.broadcast %cst_68 : f32 to vector<16x1xf32>
    %212 = arith.divf %210, %211 : vector<16x1xf32>
    %213 = vector.broadcast %212 : vector<16x1xf32> to vector<16x32xf32>
    %214 = arith.subf %206, %213 : vector<16x32xf32>
    %215 = arith.mulf %214, %214 : vector<16x32xf32>
    %cst_69 = arith.constant dense<0.000000e+00> : vector<16xf32>
    %216 = vector.multi_reduction <add>, %215, %cst_69 [1] : vector<16x32xf32> to vector<16xf32>
    %217 = vector.shape_cast %216 : vector<16xf32> to vector<16x1xf32>
    %cst_70 = arith.constant 3.200000e+01 : f32
    %218 = vector.broadcast %cst_70 : f32 to vector<16x1xf32>
    %219 = arith.divf %217, %218 : vector<16x1xf32>
    %220 = vector.broadcast %212 : vector<16x1xf32> to vector<16x32xf32>
    %221 = arith.subf %206, %220 : vector<16x32xf32>
    %cst_71 = arith.constant 9.99999996E-13 : f32
    %222 = vector.broadcast %cst_71 : f32 to vector<16x1xf32>
    %223 = arith.addf %219, %222 : vector<16x1xf32>
    %224 = math.rsqrt %223 : vector<16x1xf32>
    %225 = vector.broadcast %224 : vector<16x1xf32> to vector<16x32xf32>
    %226 = arith.mulf %221, %225 : vector<16x32xf32>
    %227 = vector.broadcast %207 : vector<1x32xf32> to vector<16x32xf32>
    %228 = arith.mulf %226, %227 : vector<16x32xf32>
    %229 = vector.broadcast %208 : vector<1x32xf32> to vector<16x32xf32>
    %230 = arith.addf %228, %229 : vector<16x32xf32>
    %c1_72 = arith.constant 1 : index
    %c0_73 = arith.constant 0 : index
    %c0_74 = arith.constant 0 : index
    %231 = vector.load %arg5[%c1_72, %c0_73, %c0_74] : memref<2x32x512xbf16, #tpu.memory_space<vmem>>, vector<1x32x512xbf16>
    %232 = vector.shape_cast %231 : vector<1x32x512xbf16> to vector<32x512xbf16>
    %233 = arith.truncf %230 : vector<16x32xf32> to vector<16x32xbf16>
    %234 = vector.extract_strided_slice %232 {offsets = [0, 0], sizes = [32, 96], strides = [1, 1]} : vector<32x512xbf16> to vector<32x96xbf16>
    %cst_75 = arith.constant dense<0.000000e+00> : vector<16x96xf32>
    %235 = tpu.matmul %233, %234, %cst_75 {dimension_numbers = #tpu.dot_dimension_numbers<[1], [0], [0], [1], [0, 0, 1, 1], [], []>} : vector<16x32xbf16>, vector<32x96xbf16>, vector<16x96xf32> -> vector<16x96xf32>
    %c10 = arith.constant 10 : index
    %c0_76 = arith.constant 0 : index
    %236 = vector.load %arg4[%c10, %c0_76] : memref<18x128xf32, #tpu.memory_space<vmem>>, vector<1x96xf32>
    %237 = vector.broadcast %236 : vector<1x96xf32> to vector<16x96xf32>
    %238 = arith.addf %235, %237 : vector<16x96xf32>
    %239 = arith.truncf %238 : vector<16x96xf32> to vector<16x96xbf16>
    %240 = vector.extract_strided_slice %239 {offsets = [0, 0], sizes = [16, 8], strides = [1, 1]} : vector<16x96xbf16> to vector<16x8xbf16>
    %241 = vector.extract_strided_slice %239 {offsets = [0, 32], sizes = [16, 8], strides = [1, 1]} : vector<16x96xbf16> to vector<16x8xbf16>
    %242 = vector.extract_strided_slice %239 {offsets = [0, 64], sizes = [16, 8], strides = [1, 1]} : vector<16x96xbf16> to vector<16x8xbf16>
    %cst_77 = arith.constant dense<0.000000e+00> : vector<16x16xf32>
    %243 = tpu.matmul %240, %241, %cst_77 {dimension_numbers = #tpu.dot_dimension_numbers<[1], [1], [0], [0], [0, 0, 1, 0], [], []>} : vector<16x8xbf16>, vector<16x8xbf16>, vector<16x16xf32> -> vector<16x16xf32>
    %cst_78 = arith.constant 0.353553385 : f32
    %244 = vector.broadcast %cst_78 : f32 to vector<16x16xf32>
    %245 = arith.mulf %243, %244 : vector<16x16xf32>
    %246 = arith.addf %245, %63 : vector<16x16xf32>
    %cst_79 = arith.constant dense<0xFF800000> : vector<16xf32>
    %247 = vector.multi_reduction <maximumf>, %246, %cst_79 [1] : vector<16x16xf32> to vector<16xf32>
    %248 = vector.shape_cast %247 : vector<16xf32> to vector<16x1xf32>
    %249 = vector.broadcast %248 : vector<16x1xf32> to vector<16x16xf32>
    %250 = arith.subf %246, %249 : vector<16x16xf32>
    %251 = math.exp %250 : vector<16x16xf32>
    %cst_80 = arith.constant dense<0.000000e+00> : vector<16xf32>
    %252 = vector.multi_reduction <add>, %251, %cst_80 [1] : vector<16x16xf32> to vector<16xf32>
    %253 = vector.shape_cast %252 : vector<16xf32> to vector<16x1xf32>
    %254 = tpu.reciprocal %253 {approx = true} : vector<16x1xf32> -> vector<16x1xf32>
    %255 = vector.broadcast %254 : vector<16x1xf32> to vector<16x16xf32>
    %256 = arith.mulf %251, %255 : vector<16x16xf32>
    %257 = arith.truncf %256 : vector<16x16xf32> to vector<16x16xbf16>
    %cst_81 = arith.constant dense<0.000000e+00> : vector<16x8xf32>
    %258 = tpu.matmul %257, %242, %cst_81 {dimension_numbers = #tpu.dot_dimension_numbers<[1], [0], [0], [1], [0, 0, 1, 1], [], []>} : vector<16x16xbf16>, vector<16x8xbf16>, vector<16x8xf32> -> vector<16x8xf32>
    %259 = vector.extract_strided_slice %239 {offsets = [0, 8], sizes = [16, 8], strides = [1, 1]} : vector<16x96xbf16> to vector<16x8xbf16>
    %260 = vector.extract_strided_slice %239 {offsets = [0, 40], sizes = [16, 8], strides = [1, 1]} : vector<16x96xbf16> to vector<16x8xbf16>
    %261 = vector.extract_strided_slice %239 {offsets = [0, 72], sizes = [16, 8], strides = [1, 1]} : vector<16x96xbf16> to vector<16x8xbf16>
    %cst_82 = arith.constant dense<0.000000e+00> : vector<16x16xf32>
    %262 = tpu.matmul %259, %260, %cst_82 {dimension_numbers = #tpu.dot_dimension_numbers<[1], [1], [0], [0], [0, 0, 1, 0], [], []>} : vector<16x8xbf16>, vector<16x8xbf16>, vector<16x16xf32> -> vector<16x16xf32>
    %cst_83 = arith.constant 0.353553385 : f32
    %263 = vector.broadcast %cst_83 : f32 to vector<16x16xf32>
    %264 = arith.mulf %262, %263 : vector<16x16xf32>
    %265 = arith.addf %264, %63 : vector<16x16xf32>
    %cst_84 = arith.constant dense<0xFF800000> : vector<16xf32>
    %266 = vector.multi_reduction <maximumf>, %265, %cst_84 [1] : vector<16x16xf32> to vector<16xf32>
    %267 = vector.shape_cast %266 : vector<16xf32> to vector<16x1xf32>
    %268 = vector.broadcast %267 : vector<16x1xf32> to vector<16x16xf32>
    %269 = arith.subf %265, %268 : vector<16x16xf32>
    %270 = math.exp %269 : vector<16x16xf32>
    %cst_85 = arith.constant dense<0.000000e+00> : vector<16xf32>
    %271 = vector.multi_reduction <add>, %270, %cst_85 [1] : vector<16x16xf32> to vector<16xf32>
    %272 = vector.shape_cast %271 : vector<16xf32> to vector<16x1xf32>
    %273 = tpu.reciprocal %272 {approx = true} : vector<16x1xf32> -> vector<16x1xf32>
    %274 = vector.broadcast %273 : vector<16x1xf32> to vector<16x16xf32>
    %275 = arith.mulf %270, %274 : vector<16x16xf32>
    %276 = arith.truncf %275 : vector<16x16xf32> to vector<16x16xbf16>
    %cst_86 = arith.constant dense<0.000000e+00> : vector<16x8xf32>
    %277 = tpu.matmul %276, %261, %cst_86 {dimension_numbers = #tpu.dot_dimension_numbers<[1], [0], [0], [1], [0, 0, 1, 1], [], []>} : vector<16x16xbf16>, vector<16x8xbf16>, vector<16x8xf32> -> vector<16x8xf32>
    %278 = vector.extract_strided_slice %239 {offsets = [0, 16], sizes = [16, 8], strides = [1, 1]} : vector<16x96xbf16> to vector<16x8xbf16>
    %279 = vector.extract_strided_slice %239 {offsets = [0, 48], sizes = [16, 8], strides = [1, 1]} : vector<16x96xbf16> to vector<16x8xbf16>
    %280 = vector.extract_strided_slice %239 {offsets = [0, 80], sizes = [16, 8], strides = [1, 1]} : vector<16x96xbf16> to vector<16x8xbf16>
    %cst_87 = arith.constant dense<0.000000e+00> : vector<16x16xf32>
    %281 = tpu.matmul %278, %279, %cst_87 {dimension_numbers = #tpu.dot_dimension_numbers<[1], [1], [0], [0], [0, 0, 1, 0], [], []>} : vector<16x8xbf16>, vector<16x8xbf16>, vector<16x16xf32> -> vector<16x16xf32>
    %cst_88 = arith.constant 0.353553385 : f32
    %282 = vector.broadcast %cst_88 : f32 to vector<16x16xf32>
    %283 = arith.mulf %281, %282 : vector<16x16xf32>
    %284 = arith.addf %283, %63 : vector<16x16xf32>
    %cst_89 = arith.constant dense<0xFF800000> : vector<16xf32>
    %285 = vector.multi_reduction <maximumf>, %284, %cst_89 [1] : vector<16x16xf32> to vector<16xf32>
    %286 = vector.shape_cast %285 : vector<16xf32> to vector<16x1xf32>
    %287 = vector.broadcast %286 : vector<16x1xf32> to vector<16x16xf32>
    %288 = arith.subf %284, %287 : vector<16x16xf32>
    %289 = math.exp %288 : vector<16x16xf32>
    %cst_90 = arith.constant dense<0.000000e+00> : vector<16xf32>
    %290 = vector.multi_reduction <add>, %289, %cst_90 [1] : vector<16x16xf32> to vector<16xf32>
    %291 = vector.shape_cast %290 : vector<16xf32> to vector<16x1xf32>
    %292 = tpu.reciprocal %291 {approx = true} : vector<16x1xf32> -> vector<16x1xf32>
    %293 = vector.broadcast %292 : vector<16x1xf32> to vector<16x16xf32>
    %294 = arith.mulf %289, %293 : vector<16x16xf32>
    %295 = arith.truncf %294 : vector<16x16xf32> to vector<16x16xbf16>
    %cst_91 = arith.constant dense<0.000000e+00> : vector<16x8xf32>
    %296 = tpu.matmul %295, %280, %cst_91 {dimension_numbers = #tpu.dot_dimension_numbers<[1], [0], [0], [1], [0, 0, 1, 1], [], []>} : vector<16x16xbf16>, vector<16x8xbf16>, vector<16x8xf32> -> vector<16x8xf32>
    %297 = vector.extract_strided_slice %239 {offsets = [0, 24], sizes = [16, 8], strides = [1, 1]} : vector<16x96xbf16> to vector<16x8xbf16>
    %298 = vector.extract_strided_slice %239 {offsets = [0, 56], sizes = [16, 8], strides = [1, 1]} : vector<16x96xbf16> to vector<16x8xbf16>
    %299 = vector.extract_strided_slice %239 {offsets = [0, 88], sizes = [16, 8], strides = [1, 1]} : vector<16x96xbf16> to vector<16x8xbf16>
    %cst_92 = arith.constant dense<0.000000e+00> : vector<16x16xf32>
    %300 = tpu.matmul %297, %298, %cst_92 {dimension_numbers = #tpu.dot_dimension_numbers<[1], [1], [0], [0], [0, 0, 1, 0], [], []>} : vector<16x8xbf16>, vector<16x8xbf16>, vector<16x16xf32> -> vector<16x16xf32>
    %cst_93 = arith.constant 0.353553385 : f32
    %301 = vector.broadcast %cst_93 : f32 to vector<16x16xf32>
    %302 = arith.mulf %300, %301 : vector<16x16xf32>
    %303 = arith.addf %302, %63 : vector<16x16xf32>
    %cst_94 = arith.constant dense<0xFF800000> : vector<16xf32>
    %304 = vector.multi_reduction <maximumf>, %303, %cst_94 [1] : vector<16x16xf32> to vector<16xf32>
    %305 = vector.shape_cast %304 : vector<16xf32> to vector<16x1xf32>
    %306 = vector.broadcast %305 : vector<16x1xf32> to vector<16x16xf32>
    %307 = arith.subf %303, %306 : vector<16x16xf32>
    %308 = math.exp %307 : vector<16x16xf32>
    %cst_95 = arith.constant dense<0.000000e+00> : vector<16xf32>
    %309 = vector.multi_reduction <add>, %308, %cst_95 [1] : vector<16x16xf32> to vector<16xf32>
    %310 = vector.shape_cast %309 : vector<16xf32> to vector<16x1xf32>
    %311 = tpu.reciprocal %310 {approx = true} : vector<16x1xf32> -> vector<16x1xf32>
    %312 = vector.broadcast %311 : vector<16x1xf32> to vector<16x16xf32>
    %313 = arith.mulf %308, %312 : vector<16x16xf32>
    %314 = arith.truncf %313 : vector<16x16xf32> to vector<16x16xbf16>
    %cst_96 = arith.constant dense<0.000000e+00> : vector<16x8xf32>
    %315 = tpu.matmul %314, %299, %cst_96 {dimension_numbers = #tpu.dot_dimension_numbers<[1], [0], [0], [1], [0, 0, 1, 1], [], []>} : vector<16x16xbf16>, vector<16x8xbf16>, vector<16x8xf32> -> vector<16x8xf32>
    %316 = tpu.concatenate %258, %277, %296, %315 in 1 : vector<16x8xf32>, vector<16x8xf32>, vector<16x8xf32>, vector<16x8xf32> -> vector<16x32xf32>
    %317 = arith.truncf %316 : vector<16x32xf32> to vector<16x32xbf16>
    %318 = vector.extract_strided_slice %232 {offsets = [0, 128], sizes = [32, 32], strides = [1, 1]} : vector<32x512xbf16> to vector<32x32xbf16>
    %cst_97 = arith.constant dense<0.000000e+00> : vector<16x32xf32>
    %319 = tpu.matmul %317, %318, %cst_97 {dimension_numbers = #tpu.dot_dimension_numbers<[1], [0], [0], [1], [0, 0, 1, 1], [], []>} : vector<16x32xbf16>, vector<32x32xbf16>, vector<16x32xf32> -> vector<16x32xf32>
    %c11 = arith.constant 11 : index
    %c0_98 = arith.constant 0 : index
    %320 = vector.load %arg4[%c11, %c0_98] : memref<18x128xf32, #tpu.memory_space<vmem>>, vector<1x32xf32>
    %321 = vector.broadcast %320 : vector<1x32xf32> to vector<16x32xf32>
    %322 = arith.addf %319, %321 : vector<16x32xf32>
    %323 = arith.addf %322, %230 : vector<16x32xf32>
    %c12 = arith.constant 12 : index
    %c0_99 = arith.constant 0 : index
    %324 = vector.load %arg4[%c12, %c0_99] : memref<18x128xf32, #tpu.memory_space<vmem>>, vector<1x32xf32>
    %c13 = arith.constant 13 : index
    %c0_100 = arith.constant 0 : index
    %325 = vector.load %arg4[%c13, %c0_100] : memref<18x128xf32, #tpu.memory_space<vmem>>, vector<1x32xf32>
    %cst_101 = arith.constant dense<0.000000e+00> : vector<16xf32>
    %326 = vector.multi_reduction <add>, %323, %cst_101 [1] : vector<16x32xf32> to vector<16xf32>
    %327 = vector.shape_cast %326 : vector<16xf32> to vector<16x1xf32>
    %cst_102 = arith.constant 3.200000e+01 : f32
    %328 = vector.broadcast %cst_102 : f32 to vector<16x1xf32>
    %329 = arith.divf %327, %328 : vector<16x1xf32>
    %330 = vector.broadcast %329 : vector<16x1xf32> to vector<16x32xf32>
    %331 = arith.subf %323, %330 : vector<16x32xf32>
    %332 = arith.mulf %331, %331 : vector<16x32xf32>
    %cst_103 = arith.constant dense<0.000000e+00> : vector<16xf32>
    %333 = vector.multi_reduction <add>, %332, %cst_103 [1] : vector<16x32xf32> to vector<16xf32>
    %334 = vector.shape_cast %333 : vector<16xf32> to vector<16x1xf32>
    %cst_104 = arith.constant 3.200000e+01 : f32
    %335 = vector.broadcast %cst_104 : f32 to vector<16x1xf32>
    %336 = arith.divf %334, %335 : vector<16x1xf32>
    %337 = vector.broadcast %329 : vector<16x1xf32> to vector<16x32xf32>
    %338 = arith.subf %323, %337 : vector<16x32xf32>
    %cst_105 = arith.constant 9.99999996E-13 : f32
    %339 = vector.broadcast %cst_105 : f32 to vector<16x1xf32>
    %340 = arith.addf %336, %339 : vector<16x1xf32>
    %341 = math.rsqrt %340 : vector<16x1xf32>
    %342 = vector.broadcast %341 : vector<16x1xf32> to vector<16x32xf32>
    %343 = arith.mulf %338, %342 : vector<16x32xf32>
    %344 = vector.broadcast %324 : vector<1x32xf32> to vector<16x32xf32>
    %345 = arith.mulf %343, %344 : vector<16x32xf32>
    %346 = vector.broadcast %325 : vector<1x32xf32> to vector<16x32xf32>
    %347 = arith.addf %345, %346 : vector<16x32xf32>
    %348 = arith.truncf %347 : vector<16x32xf32> to vector<16x32xbf16>
    %349 = vector.extract_strided_slice %232 {offsets = [0, 256], sizes = [32, 64], strides = [1, 1]} : vector<32x512xbf16> to vector<32x64xbf16>
    %cst_106 = arith.constant dense<0.000000e+00> : vector<16x64xf32>
    %350 = tpu.matmul %348, %349, %cst_106 {dimension_numbers = #tpu.dot_dimension_numbers<[1], [0], [0], [1], [0, 0, 1, 1], [], []>} : vector<16x32xbf16>, vector<32x64xbf16>, vector<16x64xf32> -> vector<16x64xf32>
    %c14 = arith.constant 14 : index
    %c0_107 = arith.constant 0 : index
    %351 = vector.load %arg4[%c14, %c0_107] : memref<18x128xf32, #tpu.memory_space<vmem>>, vector<1x64xf32>
    %352 = vector.broadcast %351 : vector<1x64xf32> to vector<16x64xf32>
    %353 = arith.addf %350, %352 : vector<16x64xf32>
    %cst_108 = arith.constant 5.000000e-01 : f32
    %354 = vector.broadcast %cst_108 : f32 to vector<16x64xf32>
    %355 = arith.mulf %354, %353 : vector<16x64xf32>
    %cst_109 = arith.constant 4.471500e-02 : f32
    %356 = vector.broadcast %cst_109 : f32 to vector<16x64xf32>
    %357 = arith.mulf %356, %353 : vector<16x64xf32>
    %358 = arith.mulf %357, %353 : vector<16x64xf32>
    %359 = arith.mulf %358, %353 : vector<16x64xf32>
    %360 = arith.addf %353, %359 : vector<16x64xf32>
    %cst_110 = arith.constant 0.797884583 : f32
    %361 = vector.broadcast %cst_110 : f32 to vector<16x64xf32>
    %362 = arith.mulf %361, %360 : vector<16x64xf32>
    %363 = math.tanh %362 : vector<16x64xf32>
    %cst_111 = arith.constant 1.000000e+00 : f32
    %364 = vector.broadcast %cst_111 : f32 to vector<16x64xf32>
    %365 = arith.addf %364, %363 : vector<16x64xf32>
    %366 = arith.mulf %355, %365 : vector<16x64xf32>
    %367 = arith.truncf %366 : vector<16x64xf32> to vector<16x64xbf16>
    %368 = vector.extract_strided_slice %232 {offsets = [0, 384], sizes = [32, 64], strides = [1, 1]} : vector<32x512xbf16> to vector<32x64xbf16>
    %cst_112 = arith.constant dense<0.000000e+00> : vector<16x32xf32>
    %369 = tpu.matmul %367, %368, %cst_112 {dimension_numbers = #tpu.dot_dimension_numbers<[1], [1], [0], [0], [0, 0, 1, 0], [], []>} : vector<16x64xbf16>, vector<32x64xbf16>, vector<16x32xf32> -> vector<16x32xf32>
    %c15 = arith.constant 15 : index
    %c0_113 = arith.constant 0 : index
    %370 = vector.load %arg4[%c15, %c0_113] : memref<18x128xf32, #tpu.memory_space<vmem>>, vector<1x32xf32>
    %371 = vector.broadcast %370 : vector<1x32xf32> to vector<16x32xf32>
    %372 = arith.addf %369, %371 : vector<16x32xf32>
    %373 = arith.addf %372, %347 : vector<16x32xf32>
    %c16 = arith.constant 16 : index
    %c0_114 = arith.constant 0 : index
    %374 = vector.load %arg4[%c16, %c0_114] : memref<18x128xf32, #tpu.memory_space<vmem>>, vector<1x32xf32>
    %c17 = arith.constant 17 : index
    %c0_115 = arith.constant 0 : index
    %375 = vector.load %arg4[%c17, %c0_115] : memref<18x128xf32, #tpu.memory_space<vmem>>, vector<1x32xf32>
    %cst_116 = arith.constant dense<0.000000e+00> : vector<16xf32>
    %376 = vector.multi_reduction <add>, %373, %cst_116 [1] : vector<16x32xf32> to vector<16xf32>
    %377 = vector.shape_cast %376 : vector<16xf32> to vector<16x1xf32>
    %cst_117 = arith.constant 3.200000e+01 : f32
    %378 = vector.broadcast %cst_117 : f32 to vector<16x1xf32>
    %379 = arith.divf %377, %378 : vector<16x1xf32>
    %380 = vector.broadcast %379 : vector<16x1xf32> to vector<16x32xf32>
    %381 = arith.subf %373, %380 : vector<16x32xf32>
    %382 = arith.mulf %381, %381 : vector<16x32xf32>
    %cst_118 = arith.constant dense<0.000000e+00> : vector<16xf32>
    %383 = vector.multi_reduction <add>, %382, %cst_118 [1] : vector<16x32xf32> to vector<16xf32>
    %384 = vector.shape_cast %383 : vector<16xf32> to vector<16x1xf32>
    %cst_119 = arith.constant 3.200000e+01 : f32
    %385 = vector.broadcast %cst_119 : f32 to vector<16x1xf32>
    %386 = arith.divf %384, %385 : vector<16x1xf32>
    %387 = vector.broadcast %379 : vector<16x1xf32> to vector<16x32xf32>
    %388 = arith.subf %373, %387 : vector<16x32xf32>
    %cst_120 = arith.constant 9.99999996E-13 : f32
    %389 = vector.broadcast %cst_120 : f32 to vector<16x1xf32>
    %390 = arith.addf %386, %389 : vector<16x1xf32>
    %391 = math.rsqrt %390 : vector<16x1xf32>
    %392 = vector.broadcast %391 : vector<16x1xf32> to vector<16x32xf32>
    %393 = arith.mulf %388, %392 : vector<16x32xf32>
    %394 = vector.broadcast %374 : vector<1x32xf32> to vector<16x32xf32>
    %395 = arith.mulf %393, %394 : vector<16x32xf32>
    %396 = vector.broadcast %375 : vector<1x32xf32> to vector<16x32xf32>
    %397 = arith.addf %395, %396 : vector<16x32xf32>
    %c0_121 = arith.constant 0 : index
    %c0_122 = arith.constant 0 : index
    %398 = vector.load %arg6[%c0_121, %c0_122] : memref<16x32xf32, #tpu.memory_space<vmem>>, vector<16x32xf32>
    tpu.vector_store %arg6[%c0_121, %c0_122], %397 {strides = array<i32>} : memref<16x32xf32, #tpu.memory_space<vmem>>, vector<16x32xf32>,
    return
  }
}

</mosaic_0001>

<bundles_post_ra>
// kernel: text_encoder_forward.1
= control target key start
LH: loop header
LB: loop body
LE: loop exit
PB: predicated region body
PF: predicated region fallthrough
CT: control target
= control target key end

     0   :  { %v2541_v0 = vmov 0   ;;  %v26_v31 = vlaneseq  ;;  %v2542_v34 = vmov 1.0   ;;  %vm163_vm6 = vcmask 261120   ;;  %s2545_s26 = smov 96   ;;  %s2546_s27 = smov 64   ;;  %s3073_s0 = inlined_call_operand.vmem [shape: s32[16,1], index: 0, kind: input, shape index: {}]   ;;  %s3074_s3 = inlined_call_operand.vmem [shape: f32[146,32], index: 3, kind: input, shape index: {}]   ;;  %s3075_s1 = inlined_call_operand.vmem [shape: s32[16,1], index: 1, kind: input, shape index: {}]   ;;  %s3076_s5 = inlined_call_operand.vmem [shape: bf16[2,32,512], index: 5, kind: input, shape index: {}]   ;;  %s3077_s4 = inlined_call_operand.vmem [shape: f32[18,128], index: 4, kind: input, shape index: {}]   ;;  %s3078_s2 = inlined_call_operand.vmem [shape: f32[1,16], index: 2, kind: input, shape index: {}]   ;;  %s3079_s6 = inlined_call_operand.vmem [shape: f32[16,32], index: 6, kind: output, shape index: {}]  }
   0x1   :  { %2393 = vset.pattern.permute.xlu0 %v2541_v0  ;;  %v24_v1 = vld [vmem:[%s3073_s0] sm:$0xff]  ;;  %2394 = vset.pattern.permute.xlu1 %v2541_v0  ;;  %v41_v3 = vld [vmem:[%s3074_s3 + $0x8] sm:$0xff]  ;;  %v42_v4 = vld [vmem:[%s3074_s3 + $0x10] sm:$0xff]  ;;  %v2543_v63 = vmov 0.0   ;;  %vm2544_vm7 = vmmov 0   ;;  %s2547_s28 = smov 120  }
   0x2   :  { %v40_v2 = vld [vmem:[%s3074_s3] sm:$0xff]  ;;  %29 = vperm.xlu0 %2393, %v24_v1   ;;  %v43_v5 = vld [vmem:[%s3074_s3 + $0x18] sm:$0xff]  ;;  %v25_v6 = vld [vmem:[%s3073_s0 + $0x8] sm:$0xff]  ;;  %v2656_v32 = vand.u32 127, %v26_v31  ;;  %2182 = vmatprep.subr.bf16.mxu1 %v2543_v63  ;;  %vm296_vm8 = vcmask 64512   ;;  %vm348_vm12 = vcmask 130048  }
   0x3   :  { %v2342_v7 = vpack.c.bf16 %v41_v3, %v40_v2  ;;  %v2346_v8 = vpack.c.bf16 %v43_v5, %v42_v4  ;;  %v44_v9 = vld [vmem:[%s3074_s3 + $0x20] sm:$0xff]  ;;  %v45_v10 = vld [vmem:[%s3074_s3 + $0x28] sm:$0xff]  ;;  %v46_v12 = vld [vmem:[%s3074_s3 + $0x30] sm:$0xff]  ;;  %2186 = vmatprep.mubr.msk.bf16.mxu1 %vm2544_vm7, %v2543_v63  ;;  %s2550_s7 = smov 56   ;;  %s2551_s8 = smov 80   ;;  %vm822_vm13 = vcmask 195584  }
   0x4   :  { %v2350_v11 = vpack.c.bf16 %v45_v10, %v44_v9  ;;  %v47_v13 = vld [vmem:[%s3074_s3 + $0x38] sm:$0xff]  ;;  %v56_v14 = vld [vmem:[%s3075_s1] sm:$0xff]  ;;  %v57_v15 = vld [vmem:[%s3075_s1 + $0x8] sm:$0xff]  ;;  %s2552_s9 = smov 104   ;;  %s2553_s10 = smov 112   ;;  %vm1017_vm14 = vcmask 523264  }
   0x5   :  { %2343 = vmatprep.subr.bf16.mxu0 %v2342_v7  ;;  %vm58_vm0 = vcmp.eq.s32.totalorder %v56_v14, 0  ;;  %vm59_vm1 = vcmp.eq.s32.totalorder %v57_v15, 0  ;;  %v2354_v17 = vpack.c.bf16 %v47_v13, %v46_v12  ;;  %v48_v18 = vld [vmem:[%s3074_s3 + $0x40] sm:$0xff]  ;;  %v49_v19 = vld [vmem:[%s3074_s3 + $0x48] sm:$0xff]  ;;  %v50_v22 = vld [vmem:[%s3074_s3 + $0x50] sm:$0xff]  ;;  %s2554_s11 = smov 72  }
   0x6   :  { %32 = vperm.xlu0 %2393, %v25_v6   ;;  %2345 = vmatpush3.bf16.msra.mxu0 %v2342_v7  ;;  %v62_v16 = vsel %vm58_vm0, 1, %v2541_v0  ;;  %v63_v20 = vsel %vm59_vm1, 1, %v2541_v0  ;;  %v2358_v21 = vpack.c.bf16 %v49_v19, %v48_v18  ;;  %v51_v23 = vld [vmem:[%s3074_s3 + $0x58] sm:$0xff]  ;;  %v52_v25 = vld [vmem:[%s3074_s3 + $0x60] sm:$0xff]  ;;  %v53_v26 = vld [vmem:[%s3074_s3 + $0x68] sm:$0xff]  ;;  %s2555_s15 = smov 40  }
   0x7   :  { %2347 = vmatprep.subr.bf16.mxu0 %v2346_v8  ;;  %65 = vperm.xlu1 %2394, %v62_v16   ;;  %v2362_v24 = vpack.c.bf16 %v51_v23, %v50_v22  ;;  %v2366_v27 = vpack.c.bf16 %v53_v26, %v52_v25  ;;  %v54_v28 = vld [vmem:[%s3074_s3 + $0x70] sm:$0xff]  ;;  %v55_v29 = vld [vmem:[%s3074_s3 + $0x78] sm:$0xff]  ;;  %v83_v43 = vld [vmem:[%s3074_s3 + $0x88] sm:$0xff]  ;;  %s2556_s16 = smov 48   ;;  %s2557_s17 = smov 8  }
   0x8   :  { %v2370_v30 = vpack.c.bf16 %v55_v29, %v54_v28  ;;  %v2003_v38 = vld [vmem:[%s3074_s3 + $0x90] ss:$0 sm:$0xff]  ;;  %v2004_v39 = vld [vmem:[%s3074_s3 + $0x91] ss:$0 sm:$0xff]  ;;  %v82_v46 = vld [vmem:[%s3074_s3 + $0x80] sm:$0xff]  ;;  %s2558_s3 = smov 16  }
   0x9   :  { %v2425_v62 = vld [vmem:[%s3076_s5] ss:$16 sps:$4 sm:$0xff]   ;;  %s2559_s18 = smov 24  }
   0xa   :  { %2349 = vmatpush3.bf16.msra.mxu0 %v2346_v8  ;;  %2183 = vmatpush3.bf16.msra.mxu1 %v2425_v62  ;;  %v2428_v0 = vld [vmem:[%s3076_s5 + $0x20] ss:$16 sps:$4 sm:$0xff]  }
   0xb   :  { %2351 = vmatprep.subr.bf16.mxu0 %v2350_v11  ;;  %68 = vperm.xlu1 %2394, %v63_v20   ;;  %v2007_v9 = vld [vmem:[%s3077_s4] ss:$0 sm:$0xff]  ;;  %v2008_v13 = vld [vmem:[%s3077_s4 + $0x1] ss:$0 sm:$0xff]  ;;  %v2009_v18 = vld [vmem:[%s3077_s4 + $0x2] ss:$0 sm:$0xff] }
   0xc   :  { %2184 = vmatprep.subr.bf16.mxu1 %v2543_v63  ;;  %v203_v29 = vld [vmem:[%s3078_s2] sm:$0x1]  ;;  %s2549_s2 = smov 88  }
   0xd   :  { %vm204_vm9 = vcmp.gt.f32.partialorder %v203_v29, 0.5 }
   0xe   :  { %2353 = vmatpush3.bf16.msra.mxu0 %v2350_v11  ;;  %2185 = vmatpush3.bf16.msra.mxu1 %v2428_v0 }
   0xf   :  { %2355 = vmatprep.subr.bf16.mxu0 %v2354_v17  ;;  %2190 = vmatprep.subr.bf16.mxu1 %v2543_v63 }
  0x12   :  { %2357 = vmatpush3.bf16.msra.mxu0 %v2354_v17 }
  0x13   :  { %2359 = vmatprep.subr.bf16.mxu0 %v2358_v21 }
  0x16   :  { %2361 = vmatpush3.bf16.msra.mxu0 %v2358_v21 }
  0x17   :  { %2363 = vmatprep.subr.bf16.mxu0 %v2362_v24 }
  0x1a   :  { %2365 = vmatpush3.bf16.msra.mxu0 %v2362_v24 }
  0x1b   :  { %2367 = vmatprep.subr.bf16.mxu0 %v2366_v27 }
  0x1e   :  { %2369 = vmatpush3.bf16.msra.mxu0 %v2366_v27 }
  0x1f   :  { %2371 = vmatprep.subr.bf16.mxu0 %v2370_v30 }
  0x22   :  { %2373 = vmatpush3.bf16.msra.mxu0 %v2370_v30  ;;  %v207_v30 = vshrl.u32 %v26_v31, 7 }
  0x23   :  { %2220 = vmatprep.subr.bf16.mxu0 %v2543_v63 }
  0x81   :  { %v30_v33 = vpop.permute.xlu0 %29 }
  0x82   :  { %vm34_vm2 = vcmp.eq.s32.totalorder %v30_v33, %v2656_v32  ;;  %v208_v33 = vadd.s32 8, %v207_v30 }
  0x83   :  { %2179 = vmatprep.mubr.msk.f32.mxu0 %vm34_vm2, %v2542_v34 }
  0x85   :  { %v33_v35 = vpop.permute.xlu0 %32 }
  0x86   :  { %vm35_vm3 = vcmp.eq.s32.totalorder %v33_v35, %v2656_v32  ;;  %v66_v36 = vpop.permute.xlu1 %65  ;;  %v2548_v35 = vmov -1e+09  }
  0x87   :  { %2180 = vmatmul.mubr.msk.f32.vlgmr.msra.gmra.mrb[0].mxu0 %vm35_vm3, %v2542_v34  ;;  %vm70_vm5 = vcmp.eq.s32.totalorder %v66_v36, 1  ;;  %v217_v34 = vsub.s32 0, %v207_v30  ;;  %v205_v36 = vsel %vm204_vm9, 0.0, %v2548_v35 }
  0x88   :  { %v80_v41 = vsel %vm70_vm5, %v2003_v38, %v2004_v39  ;;  %2222 = vmatprep.mubr.msk.bf16.mxu0 %vm2544_vm7, %v2543_v63 }
  0x8a   :  { %v69_v37 = vpop.permute.xlu1 %68 }
  0x8b   :  { %vm71_vm4 = vcmp.eq.s32.totalorder %v69_v37, 1  ;;  %v209_v37 = vshra.s32 %v207_v30, 3 }
  0x8c   :  { %v81_v40 = vsel %vm71_vm4, %v2003_v38, %v2004_v39  ;;  %v211_v38 = vshra.s32 %v2656_v32, 3  ;;  %v210_v39 = vshra.s32 %v208_v33, 3 }
  0x8e   :  { %vm212_vm10 = vcmp.eq.s32.totalorder %v209_v37, %v211_v38  ;;  %vm213_vm11 = vcmp.eq.s32.totalorder %v210_v39, %v211_v38 }
 0x15a   :  { %v2181_v42 = vpop.f32.mrb[0].mxu0 }
 0x15b   :  { %v156_v44 = vadd.f32 %v2181_v42, %v81_v40  ;;  %v150_v45 = vpop.f32.mrb[1].mxu0  ;;  %v218_v40 = vrot.slane %v205_v36, %v217_v34 }
 0x15c   :  { %v151_v47 = vadd.f32 %v150_v45, %v80_v41 }
 0x15d   :  { %v160_v48 = vadd.f32 %v156_v44, %v83_v43  ;;  %v2728_v41 = vsel %vm212_vm10, %v218_v40, -1e+09  ;;  %v2730_v45 = vsel %vm213_vm11, %v218_v40, -1e+09 }
 0x15e   :  { %v159_v49 = vadd.f32 %v151_v47, %v82_v46 }
 0x15f   :  { %v167_v50 = vsel %vm163_vm6, %v160_v48, 0.0 }
 0x160   :  { %168 = vadd.xlane.f32.xlu1 %v167_v50  ;;  %v164_v51 = vsel %vm163_vm6, %v159_v49, 0.0 }
 0x161   :  { %165 = vadd.xlane.f32.xlu0 %v164_v51 }
 0x1ed   :  { %v169_v52 = vpop.xlane.xlu1 %168 }
 0x1ee   :  { %v172_v53 = vmul.f32 0.03125, %v169_v52  ;;  %v166_v54 = vpop.xlane.xlu0 %165 }
 0x1ef   :  { %v171_v55 = vmul.f32 0.03125, %v166_v54 }
 0x1f0   :  { %v174_v56 = vsub.f32 %v160_v48, %v172_v53 }
 0x1f1   :  { %v173_v57 = vsub.f32 %v159_v49, %v171_v55 }
 0x1f2   :  { %v176_v60 = vmul.f32 %v174_v56, %v174_v56 }
 0x1f3   :  { %v175_v58 = vmul.f32 %v173_v57, %v173_v57 }
 0x1f4   :  { %v180_v61 = vsel %vm163_vm6, %v176_v60, 0.0 }
 0x1f5   :  { %v177_v59 = vsel %vm163_vm6, %v175_v58, 0.0 }
 0x1f6   :  { %178 = vadd.xlane.f32.xlu0 %v177_v59 }
 0x1fa   :  { %181 = vadd.xlane.f32.xlu0 %v180_v61 }
 0x283   :  { %v179_v1 = vpop.xlane.xlu0 %178 }
 0x284   :  { %v183_v2 = vmul.f32 0.03125, %v179_v1 }
 0x286   :  { %v185_v3 = vadd.f32 1e-12, %v183_v2 }
 0x287   :  { %v182_v4 = vpop.xlane.xlu0 %181 }
 0x288   :  { %2449 = vrsqrt.f32 %v185_v3  ;;  %v184_v5 = vmul.f32 0.03125, %v182_v4 }
 0x28a   :  { %v186_v6 = vadd.f32 1e-12, %v184_v5 }
 0x28c   :  { %2451 = vrsqrt.f32 %v186_v6 }
 0x292   :  { %v2450_v7 = vpop.eup %2449 }
 0x293   :  { %v189_v8 = vmul.f32 %v2450_v7, %v173_v57 }
 0x295   :  { %v195_v12 = vmul.f32 %v2007_v9, %v189_v8 }
 0x296   :  { %v2452_v10 = vpop.eup %2451 }
 0x297   :  { %v190_v11 = vmul.f32 %v2452_v10, %v174_v56  ;;  %v2696_v15 = vadd.f32 %v2008_v13, %v195_v12 }
 0x299   :  { %v196_v14 = vmul.f32 %v2007_v9, %v190_v11 }
 0x29b   :  { %v2698_v16 = vadd.f32 %v2008_v13, %v196_v14 }
 0x29d   :  { %v230_v17 = vpack.c.bf16 %v2698_v16, %v2696_v15 }
 0x29f   :  { %2187 = vmatmul.mubr.msk.bf16.vlgmr.msra.gmra.mrb[0].mxu1 %vm163_vm6, %v230_v17 }
 0x2a0   :  { %2192 = vmatprep.mubr.msk.bf16.mxu1 %vm2544_vm7, %v2543_v63 }
 0x372   :  { %v285_v19 = vpop.f32.mrb[0].mxu1 }
 0x373   :  { %v2188_v20 = vpop.f32.mrb[1].mxu1  ;;  %v286_v22 = vadd.f32 %v2009_v18, %v285_v19 }
 0x374   :  { %v288_v21 = vpop.f32.mrb[2].mxu1 }
 0x375   :  { %v289_v23 = vadd.f32 %v2009_v18, %v288_v21  ;;  %v2189_v24 = vpop.f32.mrb[3].mxu1 }
 0x377   :  { %v2708_v25 = vpack.c.bf16 %v289_v23, %v286_v22 }
 0x379   :  { %294 = vrot.lane.b32.xlu1 %v2708_v25, %s2545_s26 }
 0x37d   :  { %372 = vrot.lane.b32.xlu1 %v2708_v25, %s2546_s27 }
 0x381   :  { %419 = vrot.lane.b32.xlu1 %v2708_v25, %s2547_s28 }
 0x3eb   :  { %v295_v26 = vpop.permute.xlu1 %294 }
 0x3ec   :  { %v301_v27 = vsel %vm296_vm8, %v295_v26, 0 }
 0x3ed   :  { %2191 = vmatpush3.bf16.xpose.msra.mxu1 %v301_v27 }
 0x3ee   :  { %2196 = vmatprep.subr.bf16.mxu1 %v2543_v63 }
 0x3ef   :  { %v373_v28 = vpop.permute.xlu1 %372 }
 0x3f3   :  { %v420_v7 = vpop.permute.xlu1 %419 }
 0x3f4   :  { %2193 = vmatmul.mubr.msk.bf16.vlgmr.msra.gmra.mrb[4].mxu1 %vm296_vm8, %v2708_v25 }
 0x3f5   :  { %2197 = vmatpush3.bf16.msra.mxu1 %v373_v28  ;;  %2198 = vmatprep.mubr.msk.bf16.mxu1 %vm2544_vm7, %v2543_v63 }
 0x3f6   :  { %2202 = vmatprep.subr.bf16.mxu1 %v2543_v63 }
 0x4c7   :  { %v337_v42 = vpop.f32.mrb[4].mxu1 }
 0x4c8   :  { %v344_v43 = vmul.f32 0.35355338, %v337_v42  ;;  %v2194_v44 = vpop.f32.mrb[5].mxu1 }
 0x4c9   :  { %v340_v31 = vpop.f32.mrb[6].mxu1 }
 0x4ca   :  { %v345_v46 = vmul.f32 0.35355338, %v340_v31  ;;  %v2195_v47 = vpop.f32.mrb[7].mxu1  ;;  %v346_v48 = vadd.f32 %v344_v43, %v2728_v41 }
 0x4cc   :  { %v349_v49 = vsel %vm348_vm12, %v346_v48, -inf  ;;  %v347_v32 = vadd.f32 %v345_v46, %v2730_v45 }
 0x4cd   :  { %350 = vmax.xlane.f32.xlu0 %v349_v49 }
 0x4ce   :  { %v352_v50 = vsel %vm348_vm12, %v347_v32, -inf }
 0x4d1   :  { %353 = vmax.xlane.f32.xlu0 %v352_v50  ;;  %v2427_v50 = vld [vmem:[%s3076_s5 + $0x4] ss:$16 sps:$4 sm:$0xff]  }
 0x55a   :  { %v351_v51 = vpop.xlane.xlu0 %350 }
 0x55b   :  { %v355_v52 = vsub.f32 %v346_v48, %v351_v51 }
 0x55d   :  { %v357_v53 = vmul.f32 1.442695, %v355_v52  ;;  %v2430_v52 = vld [vmem:[%s3076_s5 + $0x24] ss:$16 sps:$4 sm:$0xff]  }
 0x55e   :  { %v354_v54 = vpop.xlane.xlu0 %353 }
 0x55f   :  { %2453 = vpow2.f32 %v357_v53  ;;  %v356_v55 = vsub.f32 %v347_v32, %v354_v54 }
 0x561   :  { %v359_v56 = vmul.f32 1.442695, %v356_v55 }
 0x563   :  { %2455 = vpow2.f32 %v359_v56 }
 0x569   :  { %v2454_v57 = vpop.eup %2453 }
 0x56a   :  { %v361_v58 = vsel %vm348_vm12, %v2454_v57, 0.0 }
 0x56b   :  { %362 = vadd.xlane.f32.xlu0 %v361_v58 }
 0x56d   :  { %v2456_v59 = vpop.eup %2455 }
 0x56e   :  { %v364_v60 = vsel %vm348_vm12, %v2456_v59, 0.0 }
 0x56f   :  { %365 = vadd.xlane.f32.xlu0 %v364_v60 }
 0x585   :  { %421 = vrot.lane.b32.xlu0 %v2708_v25, %s2549_s2 }
 0x5f8   :  { %v363_v61 = vpop.xlane.xlu0 %362 }
 0x5f9   :  { %2457 = vrcp.f32 %v363_v61 }
 0x5fc   :  { %v366_v62 = vpop.xlane.xlu0 %365 }
 0x5fd   :  { %2459 = vrcp.f32 %v366_v62 }
 0x600   :  { %v422_v4 = vpop.permute.xlu0 %421 }
 0x601   :  { %v427_v6 = vsel %vm296_vm8, %v422_v4, 0 }
 0x603   :  { %v2458_v0 = vpop.eup %2457 }
 0x604   :  { %v369_v2 = vmul.f32 %v2458_v0, %v2454_v57 }
 0x607   :  { %v2460_v1 = vpop.eup %2459 }
 0x608   :  { %v370_v3 = vmul.f32 %v2460_v1, %v2456_v59 }
 0x60a   :  { %v371_v5 = vpack.c.bf16 %v370_v3, %v369_v2 }
 0x60c   :  { %2199 = vmatmul.mubr.msk.bf16.vlgmr.msra.gmra.mrb[8].mxu1 %vm348_vm12, %v371_v5 }
 0x60d   :  { %2203 = vmatpush3.bf16.xpose.msra.mxu1 %v427_v6  ;;  %2204 = vmatprep.mubr.msk.bf16.mxu1 %vm2544_vm7, %v2543_v63 }
 0x60e   :  { %2208 = vmatprep.subr.bf16.mxu1 %v2543_v63 }
 0x614   :  { %2205 = vmatmul.mubr.msk.bf16.vlgmr.msra.gmra.mrb[12].mxu1 %vm296_vm8, %v420_v7 }
 0x615   :  { %2210 = vmatprep.mubr.msk.bf16.mxu1 %vm2544_vm7, %v2543_v63 }
 0x6df   :  { %v2748_v8 = vpop.f32.mrb[8].mxu1 }
 0x6e0   :  { %v2200_v9 = vpop.f32.mrb[9].mxu1 }
 0x6e1   :  { %v2750_v10 = vpop.f32.mrb[10].mxu1 }
 0x6e2   :  { %v2201_v11 = vpop.f32.mrb[11].mxu1 }
 0x6e7   :  { %v463_v12 = vpop.f32.mrb[12].mxu1 }
 0x6e8   :  { %v470_v13 = vmul.f32 0.35355338, %v463_v12  ;;  %v2206_v14 = vpop.f32.mrb[13].mxu1 }
 0x6e9   :  { %v466_v17 = vpop.f32.mrb[14].mxu1 }
 0x6ea   :  { %v471_v18 = vmul.f32 0.35355338, %v466_v17  ;;  %v2207_v19 = vpop.f32.mrb[15].mxu1  ;;  %v472_v20 = vadd.f32 %v470_v13, %v2728_v41 }
 0x6ec   :  { %v474_v21 = vsel %vm348_vm12, %v472_v20, -inf  ;;  %v473_v22 = vadd.f32 %v471_v18, %v2730_v45 }
 0x6ed   :  { %475 = vmax.xlane.f32.xlu1 %v474_v21 }
 0x6ee   :  { %v477_v23 = vsel %vm348_vm12, %v473_v22, -inf }
 0x6ef   :  { %478 = vmax.xlane.f32.xlu0 %v477_v23 }
 0x6fe   :  { %497 = vrot.lane.b32.xlu1 %v2708_v25, %s2550_s7 }
 0x705   :  { %546 = vrot.lane.b32.xlu0 %v2708_v25, %s2551_s8 }
 0x709   :  { %669 = vrot.lane.b32.xlu0 %v2708_v25, %s2552_s9 }
 0x77a   :  { %v476_v24 = vpop.xlane.xlu1 %475 }
 0x77b   :  { %v480_v26 = vsub.f32 %v472_v20, %v476_v24 }
 0x77c   :  { %v479_v27 = vpop.xlane.xlu0 %478 }
 0x77d   :  { %v482_v28 = vmul.f32 1.442695, %v480_v26  ;;  %v481_v29 = vsub.f32 %v473_v22, %v479_v27 }
 0x77e   :  { %v498_v30 = vpop.permute.xlu1 %497 }
 0x77f   :  { %2461 = vpow2.f32 %v482_v28  ;;  %v484_v33 = vmul.f32 1.442695, %v481_v29  ;;  %2209 = vmatpush3.bf16.msra.mxu1 %v498_v30 }
 0x780   :  { %2214 = vmatprep.subr.bf16.mxu1 %v2543_v63  ;;  %v547_v31 = vpop.permute.xlu0 %546 }
 0x781   :  { %2463 = vpow2.f32 %v484_v33  ;;  %v552_v48 = vsel %vm296_vm8, %v547_v31, 0 }
 0x784   :  { %v670_v51 = vpop.permute.xlu0 %669 }
 0x789   :  { %v2462_v34 = vpop.eup %2461 }
 0x78a   :  { %v486_v35 = vsel %vm348_vm12, %v2462_v34, 0.0 }
 0x78b   :  { %v2464_v36 = vpop.eup %2463  ;;  %487 = vadd.xlane.f32.xlu1 %v486_v35 }
 0x78c   :  { %v489_v37 = vsel %vm348_vm12, %v2464_v36, 0.0 }
 0x78f   :  { %490 = vadd.xlane.f32.xlu1 %v489_v37 }
 0x7a0   :  { %544 = vrot.lane.b32.xlu1 %v2708_v25, %s2553_s10 }
 0x7a4   :  { %671 = vrot.lane.b32.xlu1 %v2708_v25, %s2554_s11 }
 0x818   :  { %v488_v38 = vpop.xlane.xlu1 %487 }
 0x819   :  { %2465 = vrcp.f32 %v488_v38 }
 0x81c   :  { %v491_v39 = vpop.xlane.xlu1 %490 }
 0x81d   :  { %2467 = vrcp.f32 %v491_v39 }
 0x820   :  { %v545_v47 = vpop.permute.xlu1 %544 }
 0x823   :  { %v2466_v40 = vpop.eup %2465 }
 0x824   :  { %v494_v43 = vmul.f32 %v2466_v40, %v2462_v34  ;;  %v672_v49 = vpop.permute.xlu1 %671 }
 0x825   :  { %v677_v32 = vsel %vm296_vm8, %v672_v49, 0 }
 0x827   :  { %v2468_v42 = vpop.eup %2467 }
 0x828   :  { %v495_v44 = vmul.f32 %v2468_v42, %v2464_v36 }
 0x82a   :  { %v496_v46 = vpack.c.bf16 %v495_v44, %v494_v43 }
 0x82c   :  { %2211 = vmatmul.mubr.msk.bf16.vlgmr.msra.gmra.mrb[16].mxu1 %vm348_vm12, %v496_v46 }
 0x82d   :  { %2215 = vmatpush3.bf16.xpose.msra.mxu1 %v552_v48  ;;  %2216 = vmatprep.mubr.msk.bf16.mxu1 %vm2544_vm7, %v2543_v63 }
 0x82e   :  { %2226 = vmatprep.subr.bf16.mxu1 %v2543_v63 }
 0x834   :  { %2217 = vmatmul.mubr.msk.bf16.vlgmr.msra.gmra.mrb[20].mxu1 %vm296_vm8, %v545_v47 }
 0x835   :  { %2227 = vmatpush3.bf16.xpose.msra.mxu1 %v677_v32  ;;  %2228 = vmatprep.mubr.msk.bf16.mxu1 %vm2544_vm7, %v2543_v63 }
 0x836   :  { %2238 = vmatprep.subr.bf16.mxu1 %v2543_v63 }
 0x83c   :  { %2229 = vmatmul.mubr.msk.bf16.vlgmr.msra.gmra.mrb[24].mxu1 %vm296_vm8, %v670_v51 }
 0x83d   :  { %2239 = vmatpush3.bf16.msra.mxu1 %v2427_v50  ;;  %2242 = vmatprep.mubr.msk.bf16.mxu1 %vm2544_vm7, %v2543_v63 }
 0x83e   :  { %2240 = vmatprep.subr.bf16.mxu1 %v2543_v63 }
 0x841   :  { %2241 = vmatpush3.bf16.msra.mxu1 %v2430_v52 }
 0x842   :  { %2254 = vmatprep.subr.bf16.mxu1 %v2543_v63 }
 0x8ff   :  { %v537_v53 = vpop.f32.mrb[16].mxu1 }
 0x900   :  { %v2212_v54 = vpop.f32.mrb[17].mxu1 }
 0x901   :  { %v540_v55 = vpop.f32.mrb[18].mxu1 }
 0x902   :  { %v2395_v56 = vpack.i.bf16 %v540_v55, %v537_v53  ;;  %v2213_v57 = vpop.f32.mrb[19].mxu1 }
 0x907   :  { %v588_v58 = vpop.f32.mrb[20].mxu1 }
 0x908   :  { %v595_v59 = vmul.f32 0.35355338, %v588_v58  ;;  %v2218_v60 = vpop.f32.mrb[21].mxu1 }
 0x909   :  { %v591_v61 = vpop.f32.mrb[22].mxu1 }
 0x90a   :  { %v596_v62 = vmul.f32 0.35355338, %v591_v61  ;;  %v2219_v0 = vpop.f32.mrb[23].mxu1  ;;  %v597_v1 = vadd.f32 %v595_v59, %v2728_v41 }
 0x90c   :  { %v599_v2 = vsel %vm348_vm12, %v597_v1, -inf  ;;  %v598_v3 = vadd.f32 %v596_v62, %v2730_v45 }
 0x90d   :  { %600 = vmax.xlane.f32.xlu1 %v599_v2 }
 0x90e   :  { %v602_v4 = vsel %vm348_vm12, %v598_v3, -inf }
 0x90f   :  { %603 = vmax.xlane.f32.xlu0 %v602_v4  ;;  %v713_v5 = vpop.f32.mrb[24].mxu1 }
 0x910   :  { %v720_v6 = vmul.f32 0.35355338, %v713_v5  ;;  %v2230_v7 = vpop.f32.mrb[25].mxu1 }
 0x911   :  { %v716_v9 = vpop.f32.mrb[26].mxu1 }
 0x912   :  { %v721_v11 = vmul.f32 0.35355338, %v716_v9  ;;  %v2231_v12 = vpop.f32.mrb[27].mxu1  ;;  %v722_v13 = vadd.f32 %v720_v6, %v2728_v41 }
 0x914   :  { %v724_v14 = vsel %vm348_vm12, %v722_v13, -inf  ;;  %v723_v17 = vadd.f32 %v721_v11, %v2730_v45 }
 0x915   :  { %725 = vmax.xlane.f32.xlu0 %v724_v14 }
 0x916   :  { %v727_v18 = vsel %vm348_vm12, %v723_v17, -inf }
 0x917   :  { %728 = vmax.xlane.f32.xlu1 %v727_v18 }
 0x99a   :  { %v601_v19 = vpop.xlane.xlu1 %600 }
 0x99b   :  { %v605_v20 = vsub.f32 %v597_v1, %v601_v19 }
 0x99c   :  { %v604_v21 = vpop.xlane.xlu0 %603 }
 0x99d   :  { %v607_v22 = vmul.f32 1.442695, %v605_v20  ;;  %v606_v23 = vsub.f32 %v598_v3, %v604_v21 }
 0x99f   :  { %2469 = vpow2.f32 %v607_v22  ;;  %v609_v24 = vmul.f32 1.442695, %v606_v23 }
 0x9a1   :  { %2471 = vpow2.f32 %v609_v24 }
 0x9a2   :  { %v726_v26 = vpop.xlane.xlu0 %725 }
 0x9a3   :  { %v730_v27 = vsub.f32 %v722_v13, %v726_v26 }
 0x9a4   :  { %v729_v28 = vpop.xlane.xlu1 %728 }
 0x9a5   :  { %v732_v29 = vmul.f32 1.442695, %v730_v27  ;;  %v731_v30 = vsub.f32 %v723_v17, %v729_v28 }
 0x9a7   :  { %2473 = vpow2.f32 %v732_v29  ;;  %v734_v33 = vmul.f32 1.442695, %v731_v30 }
 0x9a9   :  { %v2470_v34 = vpop.eup %2469  ;;  %2475 = vpow2.f32 %v734_v33 }
 0x9aa   :  { %v611_v35 = vsel %vm348_vm12, %v2470_v34, 0.0 }
 0x9ab   :  { %v2472_v36 = vpop.eup %2471  ;;  %612 = vadd.xlane.f32.xlu0 %v611_v35 }
 0x9ac   :  { %v614_v37 = vsel %vm348_vm12, %v2472_v36, 0.0 }
 0x9ad   :  { %615 = vadd.xlane.f32.xlu1 %v614_v37 }
 0x9b1   :  { %v2474_v38 = vpop.eup %2473 }
 0x9b2   :  { %v736_v39 = vsel %vm348_vm12, %v2474_v38, 0.0 }
 0x9b3   :  { %v2476_v40 = vpop.eup %2475  ;;  %737 = vadd.xlane.f32.xlu0 %v736_v39 }
 0x9b4   :  { %v739_v42 = vsel %vm348_vm12, %v2476_v40, 0.0 }
 0x9b5   :  { %740 = vadd.xlane.f32.xlu1 %v739_v42 }
 0x9c6   :  { %747 = vrot.lane.b32.xlu1 %v2708_v25, %s2555_s15 }
 0x9c9   :  { %622 = vrot.lane.b32.xlu0 %v2708_v25, %s2556_s16 }
 0x9ca   :  { %2396 = vrot.lane.b32.xlu1 %v2395_v56, %s2557_s17 }
 0xa38   :  { %v613_v43 = vpop.xlane.xlu0 %612 }
 0xa39   :  { %2477 = vrcp.f32 %v613_v43 }
 0xa3a   :  { %v616_v44 = vpop.xlane.xlu1 %615 }
 0xa3b   :  { %2479 = vrcp.f32 %v616_v44 }
 0xa40   :  { %v738_v31 = vpop.xlane.xlu0 %737 }
 0xa41   :  { %2481 = vrcp.f32 %v738_v31 }
 0xa42   :  { %v741_v46 = vpop.xlane.xlu1 %740 }
 0xa43   :  { %v2478_v47 = vpop.eup %2477  ;;  %2483 = vrcp.f32 %v741_v46  ;;  %v2433_v46 = vld [vmem:[%s3076_s5 + $0x28] ss:$16 sps:$4 sm:$0xff]  }
 0xa44   :  { %v623_v48 = vpop.permute.xlu0 %622  ;;  %v619_v32 = vmul.f32 %v2478_v47, %v2470_v34 }
 0xa45   :  { %v2480_v49 = vpop.eup %2479  ;;  %2221 = vmatpush3.bf16.msra.mxu0 %v623_v48 }
 0xa46   :  { %v620_v50 = vmul.f32 %v2480_v49, %v2472_v36  ;;  %2232 = vmatprep.subr.bf16.mxu0 %v2543_v63  ;;  %v748_v51 = vpop.permute.xlu1 %747 }
 0xa48   :  { %v621_v25 = vpack.c.bf16 %v620_v50, %v619_v32 }
 0xa4a   :  { %2223 = vmatmul.mubr.msk.bf16.vlgmr.msra.gmra.mrb[4].mxu0 %vm348_vm12, %v621_v25  ;;  %v2397_v4 = vpop.permute.xlu1 %2396 }
 0xa4b   :  { %v2482_v52 = vpop.eup %2481  ;;  %2233 = vmatpush3.bf16.msra.mxu0 %v748_v51  ;;  %2234 = vmatprep.mubr.msk.bf16.mxu0 %vm2544_vm7, %v2543_v63  ;;  %v2399_v6 = vunpack.i.h.bf16 %v2397_v4  ;;  %v2398_v7 = vunpack.i.l.bf16 %v2397_v4 }
 0xa4c   :  { %2246 = vmatprep.subr.bf16.mxu0 %v2543_v63  ;;  %v744_v54 = vmul.f32 %v2482_v52, %v2474_v38 }
 0xa4d   :  { %v2484_v53 = vpop.eup %2483  ;;  %v819_v13 = vsel %vm296_vm8, %v2750_v10, %v2399_v6  ;;  %v818_v14 = vsel %vm296_vm8, %v2748_v8, %v2398_v7  ;;  %v2021_v8 = vld [vmem:[%s3077_s4 + $0x3] ss:$0 sm:$0xff] }
 0xa4e   :  { %v745_v55 = vmul.f32 %v2484_v53, %v2476_v40  ;;  %v2025_v53 = vld [vmem:[%s3077_s4 + $0x4] ss:$0 sm:$0xff] }
 0xa50   :  { %v746_v56 = vpack.c.bf16 %v745_v55, %v744_v54 }
 0xa52   :  { %2235 = vmatmul.mubr.msk.bf16.vlgmr.msra.gmra.mrb[8].mxu0 %vm348_vm12, %v746_v56 }
 0xa53   :  { %2250 = vmatprep.mubr.msk.bf16.mxu0 %vm2544_vm7, %v2543_v63 }
 0xb1d   :  { %v662_v57 = vpop.f32.mrb[4].mxu0 }
 0xb1e   :  { %v2224_v58 = vpop.f32.mrb[5].mxu0 }
 0xb1f   :  { %v665_v59 = vpop.f32.mrb[6].mxu0 }
 0xb20   :  { %v2400_v60 = vpack.i.bf16 %v665_v59, %v662_v57  ;;  %v2225_v61 = vpop.f32.mrb[7].mxu0  ;;  %v2026_v57 = vld [vmem:[%s3077_s4 + $0x5] ss:$0 sm:$0xff] }
 0xb22   :  { %2401 = vrot.lane.b32.xlu0 %v2400_v60, %s2558_s3 }
 0xb25   :  { %v787_v62 = vpop.f32.mrb[8].mxu0 }
 0xb26   :  { %v2236_v0 = vpop.f32.mrb[9].mxu0 }
 0xb27   :  { %v790_v1 = vpop.f32.mrb[10].mxu0 }
 0xb28   :  { %v2405_v2 = vpack.i.bf16 %v790_v1, %v787_v62  ;;  %v2237_v3 = vpop.f32.mrb[11].mxu0  ;;  %v2435_v62 = vld [vmem:[%s3076_s5 + $0xc] ss:$16 sps:$4 sm:$0xff]  }
 0xb29   :  { %v1022_v0 = vsel %vm1017_vm14, %v2435_v62, 0  ;;  %v2436_v1 = vld [vmem:[%s3076_s5 + $0x2c] ss:$16 sps:$4 sm:$0xff]   ;;  %v2027_v3 = vld [vmem:[%s3077_s4 + $0x6] ss:$0 sm:$0xff] }
 0xb2a   :  { %2406 = vrot.lane.b32.xlu1 %v2405_v2, %s2559_s18  ;;  %v1025_v2 = vsel %vm1017_vm14, %v2436_v1, 0 }
 0xb94   :  { %v2402_v5 = vpop.permute.xlu0 %2401 }
 0xb95   :  { %v2404_v9 = vunpack.i.h.bf16 %v2402_v5  ;;  %v2403_v11 = vunpack.i.l.bf16 %v2402_v5 }
 0xb97   :  { %v820_v19 = vsel %vm348_vm12, %v818_v14, %v2403_v11  ;;  %v821_v20 = vsel %vm348_vm12, %v819_v13, %v2404_v9 }
 0xb9c   :  { %v2407_v12 = vpop.permute.xlu1 %2406 }
 0xb9d   :  { %v2409_v17 = vunpack.i.h.bf16 %v2407_v12  ;;  %v2408_v18 = vunpack.i.l.bf16 %v2407_v12 }
 0xb9f   :  { %v823_v21 = vsel %vm822_vm13, %v820_v19, %v2408_v18  ;;  %v824_v22 = vsel %vm822_vm13, %v821_v20, %v2409_v17 }
 0xba0   :  { %v825_v23 = vpack.c.bf16 %v824_v22, %v823_v21 }
 0xba2   :  { %2243 = vmatmul.mubr.msk.bf16.vlgmr.msra.gmra.mrb[28].mxu1 %vm163_vm6, %v825_v23 }
 0xba3   :  { %2258 = vmatprep.mubr.msk.bf16.mxu1 %vm2544_vm7, %v2543_v63  ;;  %2255 = vmatpush3.bf16.xpose.msra.mxu1 %v1022_v0 }
 0xba4   :  { %2256 = vmatprep.subr.bf16.mxu1 %v2543_v63 }
 0xbab   :  { %2257 = vmatpush3.bf16.xpose.msra.mxu1 %v1025_v2 }
 0xbac   :  { %2276 = vmatprep.subr.bf16.mxu1 %v2543_v63 }
 0xc75   :  { %v876_v10 = vpop.f32.mrb[28].mxu1 }
 0xc76   :  { %v877_v24 = vadd.f32 %v2021_v8, %v876_v10  ;;  %v2244_v26 = vpop.f32.mrb[29].mxu1 }
 0xc77   :  { %v879_v27 = vpop.f32.mrb[30].mxu1 }
 0xc78   :  { %v880_v28 = vadd.f32 %v2021_v8, %v879_v27  ;;  %v2245_v29 = vpop.f32.mrb[31].mxu1  ;;  %v883_v30 = vadd.f32 %v877_v24, %v2696_v15 }
 0xc7a   :  { %v887_v33 = vsel %vm163_vm6, %v883_v30, 0.0  ;;  %v884_v34 = vadd.f32 %v880_v28, %v2698_v16  ;;  %v2431_v16 = vld [vmem:[%s3076_s5 + $0x8] ss:$16 sps:$4 sm:$0xff]  }
 0xc7b   :  { %888 = vadd.xlane.f32.xlu0 %v887_v33  ;;  %2247 = vmatpush3.bf16.msra.mxu0 %v2431_v16 }
 0xc7c   :  { %v890_v35 = vsel %vm163_vm6, %v884_v34, 0.0  ;;  %2248 = vmatprep.subr.bf16.mxu0 %v2543_v63 }
 0xc7d   :  { %891 = vadd.xlane.f32.xlu1 %v890_v35 }
 0xc7f   :  { %2249 = vmatpush3.bf16.msra.mxu0 %v2433_v46 }
 0xc80   :  { %2262 = vmatprep.subr.bf16.mxu0 %v2543_v63 }
 0xd08   :  { %v889_v36 = vpop.xlane.xlu0 %888 }
 0xd09   :  { %v893_v37 = vmul.f32 0.03125, %v889_v36 }
 0xd0a   :  { %v892_v38 = vpop.xlane.xlu1 %891 }
 0xd0b   :  { %v895_v39 = vsub.f32 %v883_v30, %v893_v37  ;;  %v894_v40 = vmul.f32 0.03125, %v892_v38 }
 0xd0d   :  { %v896_v42 = vsub.f32 %v884_v34, %v894_v40  ;;  %v897_v43 = vmul.f32 %v895_v39, %v895_v39  ;;  %v2031_v34 = vld [vmem:[%s3077_s4 + $0x7] ss:$0 sm:$0xff] }
 0xd0f   :  { %v899_v44 = vsel %vm163_vm6, %v897_v43, 0.0  ;;  %v898_v31 = vmul.f32 %v896_v42, %v896_v42 }
 0xd10   :  { %900 = vadd.xlane.f32.xlu0 %v899_v44 }
 0xd11   :  { %v902_v15 = vsel %vm163_vm6, %v898_v31, 0.0 }
 0xd14   :  { %903 = vadd.xlane.f32.xlu0 %v902_v15 }
 0xd9d   :  { %v901_v47 = vpop.xlane.xlu0 %900 }
 0xd9e   :  { %v905_v48 = vmul.f32 0.03125, %v901_v47 }
 0xda0   :  { %v907_v49 = vadd.f32 1e-12, %v905_v48 }
 0xda1   :  { %v904_v32 = vpop.xlane.xlu0 %903 }
 0xda2   :  { %2485 = vrsqrt.f32 %v907_v49  ;;  %v906_v50 = vmul.f32 0.03125, %v904_v32 }
 0xda4   :  { %v908_v25 = vadd.f32 1e-12, %v906_v50 }
 0xda6   :  { %2487 = vrsqrt.f32 %v908_v25 }
 0xdac   :  { %v2486_v51 = vpop.eup %2485 }
 0xdad   :  { %v911_v52 = vmul.f32 %v2486_v51, %v895_v39 }
 0xdaf   :  { %v917_v55 = vmul.f32 %v2025_v53, %v911_v52  ;;  %v2437_v52 = vld [vmem:[%s3076_s5 + $0x40] ss:$16 sps:$4 sm:$0xff]  }
 0xdb0   :  { %v2488_v54 = vpop.eup %2487 }
 0xdb1   :  { %v912_v56 = vmul.f32 %v2488_v54, %v896_v42  ;;  %v923_v59 = vadd.f32 %v2026_v57, %v917_v55 }
 0xdb3   :  { %v918_v58 = vmul.f32 %v2025_v53, %v912_v56  ;;  %v2439_v53 = vld [vmem:[%s3076_s5 + $0x60] ss:$16 sps:$4 sm:$0xff]  }
 0xdb5   :  { %v924_v60 = vadd.f32 %v2026_v57, %v918_v58 }
 0xdb7   :  { %v925_v61 = vpack.c.bf16 %v924_v60, %v923_v59 }
 0xdb9   :  { %2251 = vmatmul.mubr.msk.bf16.vlgmr.msra.gmra.mrb[12].mxu0 %vm163_vm6, %v925_v61  ;;  %v2035_v61 = vld [vmem:[%s3077_s4 + $0x8] ss:$0 sm:$0xff] }
 0xdba   :  { %2266 = vmatprep.mubr.msk.bf16.mxu0 %vm2544_vm7, %v2543_v63  ;;  %2263 = vmatpush3.bf16.msra.mxu0 %v2437_v52 }
 0xdbb   :  { %2264 = vmatprep.subr.bf16.mxu0 %v2543_v63 }
 0xdbe   :  { %2265 = vmatpush3.bf16.msra.mxu0 %v2439_v53 }
 0xdbf   :  { %2270 = vmatprep.subr.bf16.mxu0 %v2543_v63 }
 0xe8c   :  { %v980_v4 = vpop.f32.mrb[12].mxu0 }
 0xe8d   :  { %v981_v5 = vadd.f32 %v2027_v3, %v980_v4  ;;  %v2252_v6 = vpop.f32.mrb[13].mxu0 }
 0xe8e   :  { %v983_v7 = vpop.f32.mrb[14].mxu0 }
 0xe8f   :  { %v989_v9 = vmul.f32 0.044715, %v981_v5  ;;  %v984_v11 = vadd.f32 %v2027_v3, %v983_v7  ;;  %v2253_v12 = vpop.f32.mrb[15].mxu0  ;;  %v987_v26 = vmul.f32 0.5, %v981_v5  ;;  %v2036_v3 = vld [vmem:[%s3077_s4 + $0x9] ss:$0 sm:$0xff] }
 0xe91   :  { %v991_v13 = vmul.f32 %v989_v9, %v981_v5  ;;  %v990_v14 = vmul.f32 0.044715, %v984_v11  ;;  %v988_v27 = vmul.f32 0.5, %v984_v11  ;;  %v2045_v9 = vld [vmem:[%s3077_s4 + $0xa] ss:$0 sm:$0xff] }
 0xe93   :  { %v993_v17 = vmul.f32 %v991_v13, %v981_v5  ;;  %v992_v18 = vmul.f32 %v990_v14, %v984_v11 }
 0xe95   :  { %v995_v19 = vadd.f32 %v993_v17, %v981_v5  ;;  %v994_v20 = vmul.f32 %v992_v18, %v984_v11 }
 0xe97   :  { %v997_v21 = vmul.f32 0.7978846, %v995_v19  ;;  %v996_v22 = vadd.f32 %v994_v20, %v984_v11 }
 0xe99   :  { %2489 = vtanh.f32 %v997_v21  ;;  %v998_v23 = vmul.f32 0.7978846, %v996_v22 }
 0xe9b   :  { %2491 = vtanh.f32 %v998_v23 }
 0xea3   :  { %v2490_v8 = vpop.eup %2489 }
 0xea4   :  { %v1001_v10 = vadd.f32 1.0, %v2490_v8 }
 0xea5   :  { %v2492_v24 = vpop.eup %2491 }
 0xea6   :  { %v1002_v28 = vadd.f32 1.0, %v2492_v24  ;;  %v1003_v29 = vmul.f32 %v1001_v10, %v987_v26 }
 0xea8   :  { %v1004_v30 = vmul.f32 %v1002_v28, %v988_v27 }
 0xeaa   :  { %v1005_v33 = vpack.c.bf16 %v1004_v30, %v1003_v29 }
 0xeac   :  { %2259 = vmatmul.mubr.msk.bf16.vlgmr.msra.gmra.mrb[32].mxu1 %vm1017_vm14, %v1005_v33 }
 0xead   :  { %2278 = vmatprep.mubr.msk.bf16.mxu1 %vm2544_vm7, %v2543_v63 }
 0xf7f   :  { %v1061_v35 = vpop.f32.mrb[32].mxu1 }
 0xf80   :  { %v1062_v36 = vadd.f32 %v2031_v34, %v1061_v35  ;;  %v2260_v37 = vpop.f32.mrb[33].mxu1 }
 0xf81   :  { %v1064_v38 = vpop.f32.mrb[34].mxu1 }
 0xf82   :  { %v1065_v39 = vadd.f32 %v2031_v34, %v1064_v38  ;;  %v2261_v40 = vpop.f32.mrb[35].mxu1  ;;  %v1068_v42 = vadd.f32 %v1062_v36, %v923_v59 }
 0xf84   :  { %v1072_v43 = vsel %vm163_vm6, %v1068_v42, 0.0  ;;  %v1069_v44 = vadd.f32 %v1065_v39, %v924_v60 }
 0xf85   :  { %1073 = vadd.xlane.f32.xlu1 %v1072_v43 }
 0xf86   :  { %v1075_v31 = vsel %vm163_vm6, %v1069_v44, 0.0 }
 0xf87   :  { %1076 = vadd.xlane.f32.xlu0 %v1075_v31 }
0x1012   :  { %v1074_v15 = vpop.xlane.xlu1 %1073 }
0x1013   :  { %v1078_v16 = vmul.f32 0.03125, %v1074_v15 }
0x1014   :  { %v1077_v46 = vpop.xlane.xlu0 %1076 }
0x1015   :  { %v1080_v47 = vsub.f32 %v1068_v42, %v1078_v16  ;;  %v1079_v48 = vmul.f32 0.03125, %v1077_v46 }
0x1017   :  { %v1081_v49 = vsub.f32 %v1069_v44, %v1079_v48  ;;  %v1082_v32 = vmul.f32 %v1080_v47, %v1080_v47 }
0x1019   :  { %v1084_v50 = vsel %vm163_vm6, %v1082_v32, 0.0  ;;  %v1083_v25 = vmul.f32 %v1081_v49, %v1081_v49 }
0x101a   :  { %1085 = vadd.xlane.f32.xlu1 %v1084_v50 }
0x101b   :  { %v1087_v51 = vsel %vm163_vm6, %v1083_v25, 0.0 }
0x101c   :  { %1088 = vadd.xlane.f32.xlu0 %v1087_v51 }
0x10a7   :  { %v1086_v54 = vpop.xlane.xlu1 %1085 }
0x10a8   :  { %v1090_v55 = vmul.f32 0.03125, %v1086_v54 }
0x10a9   :  { %v1089_v56 = vpop.xlane.xlu0 %1088 }
0x10aa   :  { %v1092_v57 = vadd.f32 1e-12, %v1090_v55  ;;  %v1091_v58 = vmul.f32 0.03125, %v1089_v56 }
0x10ac   :  { %2493 = vrsqrt.f32 %v1092_v57  ;;  %v1093_v59 = vadd.f32 1e-12, %v1091_v58 }
0x10ae   :  { %2495 = vrsqrt.f32 %v1093_v59 }
0x10b6   :  { %v2494_v60 = vpop.eup %2493 }
0x10b7   :  { %v1096_v62 = vmul.f32 %v2494_v60, %v1080_v47 }
0x10b8   :  { %v2496_v0 = vpop.eup %2495 }
0x10b9   :  { %v1102_v1 = vmul.f32 %v2035_v61, %v1096_v62  ;;  %v1097_v2 = vmul.f32 %v2496_v0, %v1081_v49 }
0x10bb   :  { %v1103_v4 = vmul.f32 %v2035_v61, %v1097_v2  ;;  %v2891_v5 = vadd.f32 %v2036_v3, %v1102_v1 }
0x10bd   :  { %v2893_v6 = vadd.f32 %v2036_v3, %v1103_v4 }
0x10bf   :  { %v1119_v7 = vpack.c.bf16 %v2893_v6, %v2891_v5 }
0x10c1   :  { %2267 = vmatmul.mubr.msk.bf16.vlgmr.msra.gmra.mrb[16].mxu0 %vm163_vm6, %v1119_v7 }
0x10c2   :  { %2272 = vmatprep.mubr.msk.bf16.mxu0 %vm2544_vm7, %v2543_v63 }
0x1194   :  { %v1174_v11 = vpop.f32.mrb[16].mxu0 }
0x1195   :  { %v2268_v12 = vpop.f32.mrb[17].mxu0  ;;  %v1175_v14 = vadd.f32 %v2045_v9, %v1174_v11 }
0x1196   :  { %v1177_v13 = vpop.f32.mrb[18].mxu0 }
0x1197   :  { %v1178_v17 = vadd.f32 %v2045_v9, %v1177_v13  ;;  %v2269_v18 = vpop.f32.mrb[19].mxu0 }
0x1199   :  { %v2903_v19 = vpack.c.bf16 %v1178_v17, %v1175_v14 }
0x119b   :  { %1308 = vrot.lane.b32.xlu0 %v2903_v19, %s2549_s2  ;;  %1183 = vrot.lane.b32.xlu1 %v2903_v19, %s2545_s26 }
0x119f   :  { %1431 = vrot.lane.b32.xlu0 %v2903_v19, %s2553_s10  ;;  %1306 = vrot.lane.b32.xlu1 %v2903_v19, %s2547_s28 }
0x11a3   :  { %1556 = vrot.lane.b32.xlu0 %v2903_v19, %s2552_s9  ;;  %1433 = vrot.lane.b32.xlu1 %v2903_v19, %s2551_s8 }
0x11a7   :  { %1558 = vrot.lane.b32.xlu1 %v2903_v19, %s2554_s11 }
0x120d   :  { %v1184_v20 = vpop.permute.xlu1 %1183  ;;  %v1309_v22 = vpop.permute.xlu0 %1308 }
0x120e   :  { %v1189_v21 = vsel %vm296_vm8, %v1184_v20, 0  ;;  %v1314_v8 = vsel %vm296_vm8, %v1309_v22, 0 }
0x120f   :  { %2271 = vmatpush3.bf16.xpose.msra.mxu0 %v1189_v21 }
0x1210   :  { %2282 = vmatprep.subr.bf16.mxu0 %v2543_v63 }
0x1211   :  { %v1307_v23 = vpop.permute.xlu1 %1306  ;;  %v1432_v27 = vpop.permute.xlu0 %1431 }
0x1215   :  { %v1434_v10 = vpop.permute.xlu1 %1433  ;;  %v1557_v29 = vpop.permute.xlu0 %1556 }
0x1216   :  { %2273 = vmatmul.mubr.msk.bf16.vlgmr.msra.gmra.mrb[20].mxu0 %vm296_vm8, %v2903_v19  ;;  %v1439_v24 = vsel %vm296_vm8, %v1434_v10, 0 }
0x1217   :  { %2283 = vmatpush3.bf16.xpose.msra.mxu0 %v1314_v8  ;;  %2284 = vmatprep.mubr.msk.bf16.mxu0 %vm2544_vm7, %v2543_v63 }
0x1218   :  { %2294 = vmatprep.subr.bf16.mxu0 %v2543_v63 }
0x1219   :  { %v1559_v26 = vpop.permute.xlu1 %1558 }
0x121a   :  { %v1564_v28 = vsel %vm296_vm8, %v1559_v26, 0 }
0x121e   :  { %2285 = vmatmul.mubr.msk.bf16.vlgmr.msra.gmra.mrb[24].mxu0 %vm296_vm8, %v1307_v23 }
0x121f   :  { %2295 = vmatpush3.bf16.xpose.msra.mxu0 %v1439_v24  ;;  %2296 = vmatprep.mubr.msk.bf16.mxu0 %vm2544_vm7, %v2543_v63 }
0x1220   :  { %2306 = vmatprep.subr.bf16.mxu0 %v2543_v63 }
0x1226   :  { %2297 = vmatmul.mubr.msk.bf16.vlgmr.msra.gmra.mrb[28].mxu0 %vm296_vm8, %v1432_v27 }
0x1227   :  { %2307 = vmatpush3.bf16.xpose.msra.mxu0 %v1564_v28  ;;  %2308 = vmatprep.mubr.msk.bf16.mxu0 %vm2544_vm7, %v2543_v63 }
0x1228   :  { %2318 = vmatprep.subr.bf16.mxu0 %v2543_v63 }
0x122e   :  { %2309 = vmatmul.mubr.msk.bf16.vlgmr.msra.gmra.mrb[32].mxu0 %vm296_vm8, %v1557_v29 }
0x122f   :  { %2322 = vmatprep.mubr.msk.bf16.mxu0 %vm2544_vm7, %v2543_v63 }
0x12e9   :  { %v1225_v30 = vpop.f32.mrb[20].mxu0 }
0x12ea   :  { %v1232_v33 = vmul.f32 0.35355338, %v1225_v30  ;;  %v2274_v34 = vpop.f32.mrb[21].mxu0 }
0x12eb   :  { %v1228_v35 = vpop.f32.mrb[22].mxu0 }
0x12ec   :  { %v1233_v36 = vmul.f32 0.35355338, %v1228_v35  ;;  %v2275_v37 = vpop.f32.mrb[23].mxu0  ;;  %v1234_v38 = vadd.f32 %v1232_v33, %v2728_v41 }
0x12ee   :  { %v1236_v39 = vsel %vm348_vm12, %v1234_v38, -inf  ;;  %v1235_v40 = vadd.f32 %v1233_v36, %v2730_v45 }
0x12ef   :  { %1237 = vmax.xlane.f32.xlu1 %v1236_v39 }
0x12f0   :  { %v1239_v42 = vsel %vm348_vm12, %v1235_v40, -inf }
0x12f1   :  { %1240 = vmax.xlane.f32.xlu0 %v1239_v42  ;;  %v1350_v43 = vpop.f32.mrb[24].mxu0 }
0x12f2   :  { %v1357_v44 = vmul.f32 0.35355338, %v1350_v43  ;;  %v2286_v31 = vpop.f32.mrb[25].mxu0 }
0x12f3   :  { %v1353_v15 = vpop.f32.mrb[26].mxu0 }
0x12f4   :  { %v1358_v16 = vmul.f32 0.35355338, %v1353_v15  ;;  %v2287_v46 = vpop.f32.mrb[27].mxu0  ;;  %v1359_v47 = vadd.f32 %v1357_v44, %v2728_v41 }
0x12f6   :  { %v1361_v48 = vsel %vm348_vm12, %v1359_v47, -inf  ;;  %v1360_v49 = vadd.f32 %v1358_v16, %v2730_v45 }
0x12f7   :  { %1362 = vmax.xlane.f32.xlu0 %v1361_v48 }
0x12f8   :  { %v1364_v32 = vsel %vm348_vm12, %v1360_v49, -inf }
0x12f9   :  { %1365 = vmax.xlane.f32.xlu1 %v1364_v32  ;;  %v1475_v50 = vpop.f32.mrb[28].mxu0 }
0x12fa   :  { %v1482_v25 = vmul.f32 0.35355338, %v1475_v50  ;;  %v2298_v51 = vpop.f32.mrb[29].mxu0 }
0x12fb   :  { %v1478_v52 = vpop.f32.mrb[30].mxu0 }
0x12fc   :  { %v1483_v53 = vmul.f32 0.35355338, %v1478_v52  ;;  %v2299_v54 = vpop.f32.mrb[31].mxu0  ;;  %v1484_v55 = vadd.f32 %v1482_v25, %v2728_v41 }
0x12fe   :  { %v1486_v56 = vsel %vm348_vm12, %v1484_v55, -inf  ;;  %v1485_v57 = vadd.f32 %v1483_v53, %v2730_v45 }
0x12ff   :  { %1487 = vmax.xlane.f32.xlu0 %v1486_v56 }
0x1300   :  { %v1489_v58 = vsel %vm348_vm12, %v1485_v57, -inf }
0x1301   :  { %1490 = vmax.xlane.f32.xlu1 %v1489_v58  ;;  %v1600_v59 = vpop.f32.mrb[32].mxu0 }
0x1302   :  { %v1607_v60 = vmul.f32 0.35355338, %v1600_v59  ;;  %v2310_v61 = vpop.f32.mrb[33].mxu0 }
0x1303   :  { %v1603_v62 = vpop.f32.mrb[34].mxu0 }
0x1304   :  { %v1608_v0 = vmul.f32 0.35355338, %v1603_v62  ;;  %v2311_v1 = vpop.f32.mrb[35].mxu0  ;;  %v1609_v2 = vadd.f32 %v1607_v60, %v2728_v41 }
0x1306   :  { %v1611_v3 = vsel %vm348_vm12, %v1609_v2, -inf  ;;  %v1610_v4 = vadd.f32 %v1608_v0, %v2730_v45 }
0x1307   :  { %1612 = vmax.xlane.f32.xlu0 %v1611_v3 }
0x1308   :  { %v1614_v7 = vsel %vm348_vm12, %v1610_v4, -inf }
0x1309   :  { %1615 = vmax.xlane.f32.xlu1 %v1614_v7 }
0x137c   :  { %v1238_v9 = vpop.xlane.xlu1 %1237 }
0x137d   :  { %v1242_v11 = vsub.f32 %v1234_v38, %v1238_v9 }
0x137e   :  { %v1241_v12 = vpop.xlane.xlu0 %1240 }
0x137f   :  { %v1244_v13 = vmul.f32 1.442695, %v1242_v11  ;;  %v1243_v14 = vsub.f32 %v1235_v40, %v1241_v12 }
0x1381   :  { %2497 = vpow2.f32 %v1244_v13  ;;  %v1246_v17 = vmul.f32 1.442695, %v1243_v14 }
0x1383   :  { %2499 = vpow2.f32 %v1246_v17 }
0x1384   :  { %v1363_v18 = vpop.xlane.xlu0 %1362 }
0x1385   :  { %v1367_v20 = vsub.f32 %v1359_v47, %v1363_v18 }
0x1386   :  { %v1366_v24 = vpop.xlane.xlu1 %1365 }
0x1387   :  { %v1369_v21 = vmul.f32 1.442695, %v1367_v20  ;;  %v1368_v26 = vsub.f32 %v1360_v49, %v1366_v24 }
0x1389   :  { %2501 = vpow2.f32 %v1369_v21  ;;  %v1371_v29 = vmul.f32 1.442695, %v1368_v26 }
0x138b   :  { %v2498_v41 = vpop.eup %2497  ;;  %2503 = vpow2.f32 %v1371_v29 }
0x138c   :  { %v1248_v22 = vsel %vm348_vm12, %v2498_v41, 0.0  ;;  %v1488_v28 = vpop.xlane.xlu0 %1487 }
0x138d   :  { %v2500_v45 = vpop.eup %2499  ;;  %1249 = vadd.xlane.f32.xlu0 %v1248_v22  ;;  %v1492_v34 = vsub.f32 %v1484_v55, %v1488_v28  ;;  %v2441_v28 = vld [vmem:[%s3076_s5 + $0x44] ss:$16 sps:$4 sm:$0xff]  }
0x138e   :  { %v1251_v23 = vsel %vm348_vm12, %v2500_v45, 0.0  ;;  %v1491_v27 = vpop.xlane.xlu1 %1490  ;;  %2319 = vmatpush3.bf16.msra.mxu0 %v2441_v28 }
0x138f   :  { %1252 = vadd.xlane.f32.xlu1 %v1251_v23  ;;  %v1493_v30 = vsub.f32 %v1485_v57, %v1491_v27  ;;  %v1494_v38 = vmul.f32 1.442695, %v1492_v34  ;;  %2320 = vmatprep.subr.bf16.mxu0 %v2543_v63 }
0x1391   :  { %v1496_v36 = vmul.f32 1.442695, %v1493_v30 }
0x1393   :  { %v2958_v8 = vpop.eup %2501  ;;  %2505 = vpow2.f32 %v1496_v36 }
0x1394   :  { %v1373_v10 = vsel %vm348_vm12, %v2958_v8, 0.0  ;;  %v1613_v35 = vpop.xlane.xlu0 %1612  ;;  %2507 = vpow2.f32 %v1494_v38 }
0x1395   :  { %1374 = vadd.xlane.f32.xlu0 %v1373_v10  ;;  %v1617_v39 = vsub.f32 %v1609_v2, %v1613_v35  ;;  %v2504_v43 = vpop.eup %2503  ;;  %v2442_v35 = vld [vmem:[%s3076_s5 + $0x64] ss:$16 sps:$4 sm:$0xff]  }
0x1396   :  { %v1616_v33 = vpop.xlane.xlu1 %1615  ;;  %v1376_v44 = vsel %vm348_vm12, %v2504_v43, 0.0  ;;  %2321 = vmatpush3.bf16.msra.mxu0 %v2442_v35 }
0x1397   :  { %v1618_v37 = vsub.f32 %v1610_v4, %v1616_v33  ;;  %v1619_v42 = vmul.f32 1.442695, %v1617_v39  ;;  %2334 = vmatprep.subr.bf16.mxu0 %v2543_v63 }
0x1399   :  { %v1621_v40 = vmul.f32 1.442695, %v1618_v37 }
0x139b   :  { %2509 = vpow2.f32 %v1621_v40 }
0x139c   :  { %2511 = vpow2.f32 %v1619_v42 }
0x139d   :  { %v2506_v31 = vpop.eup %2505 }
0x139e   :  { %v2508_v15 = vpop.eup %2507  ;;  %v1501_v16 = vsel %vm348_vm12, %v2506_v31, 0.0 }
0x139f   :  { %v1498_v47 = vsel %vm348_vm12, %v2508_v15, 0.0 }
0x13a0   :  { %1384 = vrot.lane.b32.xlu1 %v2903_v19, %s2550_s7 }
0x13a5   :  { %v2968_v46 = vpop.eup %2509 }
0x13a6   :  { %v2512_v48 = vpop.eup %2511  ;;  %v1626_v49 = vsel %vm348_vm12, %v2968_v46, 0.0 }
0x13a7   :  { %v1623_v32 = vsel %vm348_vm12, %v2512_v48, 0.0 }
0x13ab   :  { %1259 = vrot.lane.b32.xlu0 %v2903_v19, %s2546_s27 }
0x13c4   :  { %1377 = vadd.xlane.f32.xlu1 %v1376_v44 }
0x13c8   :  { %1502 = vadd.xlane.f32.xlu1 %v1501_v16 }
0x13ca   :  { %1499 = vadd.xlane.f32.xlu0 %v1498_v47 }
0x13cc   :  { %1627 = vadd.xlane.f32.xlu1 %v1626_v49 }
0x13ce   :  { %1624 = vadd.xlane.f32.xlu0 %v1623_v32 }
0x13dd   :  { %1509 = vrot.lane.b32.xlu1 %v2903_v19, %s2556_s16 }
0x13e4   :  { %1634 = vrot.lane.b32.xlu0 %v2903_v19, %s2555_s15 }
0x141a   :  { %v1250_v50 = vpop.xlane.xlu0 %1249 }
0x141b   :  { %2513 = vrcp.f32 %v1250_v50 }
0x141c   :  { %v1253_v25 = vpop.xlane.xlu1 %1252 }
0x141d   :  { %2515 = vrcp.f32 %v1253_v25 }
0x1420   :  { %v1385_v58 = vpop.permute.xlu1 %1384 }
0x1422   :  { %v1375_v51 = vpop.xlane.xlu0 %1374 }
0x1423   :  { %2517 = vrcp.f32 %v1375_v51 }
0x1425   :  { %v2514_v52 = vpop.eup %2513 }
0x1426   :  { %v1260_v53 = vpop.permute.xlu0 %1259  ;;  %v1256_v55 = vmul.f32 %v2514_v52, %v2498_v41 }
0x1427   :  { %v2516_v54 = vpop.eup %2515  ;;  %2277 = vmatpush3.bf16.msra.mxu1 %v1260_v53 }
0x1428   :  { %v1257_v56 = vmul.f32 %v2516_v54, %v2500_v45  ;;  %2288 = vmatprep.subr.bf16.mxu1 %v2543_v63 }
0x142a   :  { %v1258_v57 = vpack.c.bf16 %v1257_v56, %v1256_v55 }
0x142c   :  { %2279 = vmatmul.mubr.msk.bf16.vlgmr.msra.gmra.mrb[36].mxu1 %vm348_vm12, %v1258_v57  ;;  %v2057_v57 = vld [vmem:[%s3077_s4 + $0xb] ss:$0 sm:$0xff] }
0x142d   :  { %2289 = vmatpush3.bf16.msra.mxu1 %v1385_v58  ;;  %2290 = vmatprep.mubr.msk.bf16.mxu1 %vm2544_vm7, %v2543_v63  ;;  %v2518_v61 = vpop.eup %2517 }
0x142e   :  { %2300 = vmatprep.subr.bf16.mxu1 %v2543_v63  ;;  %v1381_v2 = vmul.f32 %v2518_v61, %v2958_v8 }
0x1451   :  { %v1378_v19 = vpop.xlane.xlu1 %1377 }
0x1452   :  { %2519 = vrcp.f32 %v1378_v19 }
0x1455   :  { %v1503_v59 = vpop.xlane.xlu1 %1502 }
0x1456   :  { %2521 = vrcp.f32 %v1503_v59 }
0x1457   :  { %v1500_v60 = vpop.xlane.xlu0 %1499 }
0x1458   :  { %2523 = vrcp.f32 %v1500_v60 }
0x1459   :  { %v1628_v62 = vpop.xlane.xlu1 %1627 }
0x145b   :  { %v1625_v0 = vpop.xlane.xlu0 %1624 }
0x145c   :  { %v2520_v1 = vpop.eup %2519  ;;  %2525 = vrcp.f32 %v1625_v0 }
0x145d   :  { %v1382_v3 = vmul.f32 %v2520_v1, %v2504_v43  ;;  %2527 = vrcp.f32 %v1628_v62  ;;  %v1510_v9 = vpop.permute.xlu1 %1509 }
0x145f   :  { %v1383_v4 = vpack.c.bf16 %v1382_v3, %v1381_v2  ;;  %v1635_v18 = vpop.permute.xlu0 %1634 }
0x1460   :  { %v2522_v7 = vpop.eup %2521 }
0x1461   :  { %2291 = vmatmul.mubr.msk.bf16.vlgmr.msra.gmra.mrb[40].mxu1 %vm348_vm12, %v1383_v4  ;;  %v1507_v13 = vmul.f32 %v2522_v7, %v2506_v31 }
0x1462   :  { %v2524_v11 = vpop.eup %2523  ;;  %2301 = vmatpush3.bf16.msra.mxu1 %v1510_v9  ;;  %2302 = vmatprep.mubr.msk.bf16.mxu1 %vm2544_vm7, %v2543_v63 }
0x1463   :  { %v1506_v12 = vmul.f32 %v2524_v11, %v2508_v15  ;;  %2312 = vmatprep.subr.bf16.mxu1 %v2543_v63 }
0x1465   :  { %v1508_v14 = vpack.c.bf16 %v1507_v13, %v1506_v12 }
0x1466   :  { %v2526_v17 = vpop.eup %2525 }
0x1467   :  { %v2528_v20 = vpop.eup %2527  ;;  %v1631_v21 = vmul.f32 %v2526_v17, %v2512_v48 }
0x1468   :  { %v1632_v41 = vmul.f32 %v2528_v20, %v2968_v46  ;;  %v2445_v20 = vld [vmem:[%s3076_s5 + $0x68] ss:$16 sps:$4 sm:$0xff]  }
0x1469   :  { %2303 = vmatmul.mubr.msk.bf16.vlgmr.msra.gmra.mrb[44].mxu1 %vm348_vm12, %v1508_v14 }
0x146a   :  { %2313 = vmatpush3.bf16.msra.mxu1 %v1635_v18  ;;  %2314 = vmatprep.mubr.msk.bf16.mxu1 %vm2544_vm7, %v2543_v63  ;;  %v1633_v22 = vpack.c.bf16 %v1632_v41, %v1631_v21 }
0x146b   :  { %2326 = vmatprep.subr.bf16.mxu1 %v2543_v63 }
0x1471   :  { %2315 = vmatmul.mubr.msk.bf16.vlgmr.msra.gmra.mrb[48].mxu1 %vm348_vm12, %v1633_v22 }
0x1472   :  { %2330 = vmatprep.mubr.msk.bf16.mxu1 %vm2544_vm7, %v2543_v63 }
0x14ff   :  { %v1299_v45 = vpop.f32.mrb[36].mxu1 }
0x1500   :  { %v2280_v23 = vpop.f32.mrb[37].mxu1 }
0x1501   :  { %v1302_v8 = vpop.f32.mrb[38].mxu1 }
0x1502   :  { %v2281_v10 = vpop.f32.mrb[39].mxu1 }
0x1534   :  { %v1424_v24 = vpop.f32.mrb[40].mxu1 }
0x1535   :  { %v2292_v26 = vpop.f32.mrb[41].mxu1 }
0x1536   :  { %v1427_v27 = vpop.f32.mrb[42].mxu1  ;;  %v2061_v26 = vld [vmem:[%s3077_s4 + $0xc] ss:$0 sm:$0xff] }
0x1537   :  { %v2410_v29 = vpack.i.bf16 %v1427_v27, %v1424_v24  ;;  %v2293_v30 = vpop.f32.mrb[43].mxu1 }
0x1538   :  { %v2062_v30 = vld [vmem:[%s3077_s4 + $0xd] ss:$0 sm:$0xff] }
0x1539   :  { %2411 = vrot.lane.b32.xlu1 %v2410_v29, %s2557_s17 }
0x153c   :  { %v1549_v33 = vpop.f32.mrb[44].mxu1 }
0x153d   :  { %v2304_v34 = vpop.f32.mrb[45].mxu1 }
0x153e   :  { %v1552_v36 = vpop.f32.mrb[46].mxu1 }
0x153f   :  { %v2415_v37 = vpack.i.bf16 %v1552_v36, %v1549_v33  ;;  %v2305_v38 = vpop.f32.mrb[47].mxu1 }
0x1541   :  { %2416 = vrot.lane.b32.xlu0 %v2415_v37, %s2558_s3  ;;  %v2447_v37 = vld [vmem:[%s3076_s5 + $0x4c] ss:$16 sps:$4 sm:$0xff]  }
0x1542   :  { %v1907_v38 = vsel %vm1017_vm14, %v2447_v37, 0 }
0x1544   :  { %v1674_v39 = vpop.f32.mrb[48].mxu1 }
0x1545   :  { %v2316_v40 = vpop.f32.mrb[49].mxu1 }
0x1546   :  { %v1677_v42 = vpop.f32.mrb[50].mxu1 }
0x1547   :  { %v2420_v43 = vpack.i.bf16 %v1677_v42, %v1674_v39  ;;  %v2317_v44 = vpop.f32.mrb[51].mxu1  ;;  %v2448_v39 = vld [vmem:[%s3076_s5 + $0x6c] ss:$16 sps:$4 sm:$0xff]  }
0x1548   :  { %v1910_v40 = vsel %vm1017_vm14, %v2448_v39, 0  ;;  %v2063_v42 = vld [vmem:[%s3077_s4 + $0xe] ss:$0 sm:$0xff] }
0x1549   :  { %2421 = vrot.lane.b32.xlu1 %v2420_v43, %s2559_s18 }
0x15ab   :  { %v2412_v31 = vpop.permute.xlu1 %2411 }
0x15ac   :  { %v2414_v16 = vunpack.i.h.bf16 %v2412_v31  ;;  %v2413_v46 = vunpack.i.l.bf16 %v2412_v31 }
0x15ae   :  { %v1706_v32 = vsel %vm296_vm8, %v1302_v8, %v2414_v16  ;;  %v1705_v50 = vsel %vm296_vm8, %v1299_v45, %v2413_v46 }
0x15b3   :  { %v2417_v15 = vpop.permute.xlu0 %2416 }
0x15b4   :  { %v2419_v47 = vunpack.i.h.bf16 %v2417_v15  ;;  %v2418_v48 = vunpack.i.l.bf16 %v2417_v15 }
0x15b6   :  { %v1708_v52 = vsel %vm348_vm12, %v1706_v32, %v2419_v47  ;;  %v1707_v53 = vsel %vm348_vm12, %v1705_v50, %v2418_v48 }
0x15bb   :  { %v2422_v49 = vpop.permute.xlu1 %2421 }
0x15bc   :  { %v2424_v25 = vunpack.i.h.bf16 %v2422_v49  ;;  %v2423_v51 = vunpack.i.l.bf16 %v2422_v49 }
0x15be   :  { %v1710_v54 = vsel %vm822_vm13, %v1708_v52, %v2424_v25  ;;  %v1709_v55 = vsel %vm822_vm13, %v1707_v53, %v2423_v51 }
0x15bf   :  { %v1711_v56 = vpack.c.bf16 %v1710_v54, %v1709_v55 }
0x15c1   :  { %2323 = vmatmul.mubr.msk.bf16.vlgmr.msra.gmra.mrb[36].mxu0 %vm163_vm6, %v1711_v56 }
0x15c2   :  { %2338 = vmatprep.mubr.msk.bf16.mxu0 %vm2544_vm7, %v2543_v63  ;;  %2335 = vmatpush3.bf16.xpose.msra.mxu0 %v1907_v38 }
0x15c3   :  { %2336 = vmatprep.subr.bf16.mxu0 %v2543_v63 }
0x15ca   :  { %2337 = vmatpush3.bf16.xpose.msra.mxu0 %v1910_v40 }
0x1694   :  { %v1762_v58 = vpop.f32.mrb[36].mxu0 }
0x1695   :  { %v1763_v19 = vadd.f32 %v2057_v57, %v1762_v58  ;;  %v2324_v59 = vpop.f32.mrb[37].mxu0 }
0x1696   :  { %v1765_v60 = vpop.f32.mrb[38].mxu0 }
0x1697   :  { %v1766_v61 = vadd.f32 %v2057_v57, %v1765_v60  ;;  %v2325_v62 = vpop.f32.mrb[39].mxu0  ;;  %v1769_v0 = vadd.f32 %v1763_v19, %v2891_v5 }
0x1698   :  { %v2067_v62 = vld [vmem:[%s3077_s4 + $0xf] ss:$0 sm:$0xff] }
0x1699   :  { %v1773_v1 = vsel %vm163_vm6, %v1769_v0, 0.0  ;;  %v1770_v2 = vadd.f32 %v1766_v61, %v2893_v6  ;;  %v2443_v6 = vld [vmem:[%s3076_s5 + $0x48] ss:$16 sps:$4 sm:$0xff]  }
0x169a   :  { %1774 = vadd.xlane.f32.xlu0 %v1773_v1  ;;  %2327 = vmatpush3.bf16.msra.mxu1 %v2443_v6 }
0x169b   :  { %v1776_v3 = vsel %vm163_vm6, %v1770_v2, 0.0  ;;  %2328 = vmatprep.subr.bf16.mxu1 %v2543_v63 }
0x169c   :  { %1777 = vadd.xlane.f32.xlu1 %v1776_v3 }
0x169e   :  { %2329 = vmatpush3.bf16.msra.mxu1 %v2445_v20 }
0x1727   :  { %v1775_v4 = vpop.xlane.xlu0 %1774 }
0x1728   :  { %v1779_v7 = vmul.f32 0.03125, %v1775_v4 }
0x1729   :  { %v1778_v9 = vpop.xlane.xlu1 %1777 }
0x172a   :  { %v1781_v11 = vsub.f32 %v1769_v0, %v1779_v7  ;;  %v1780_v12 = vmul.f32 0.03125, %v1778_v9 }
0x172c   :  { %v1782_v13 = vsub.f32 %v1770_v2, %v1780_v12  ;;  %v1783_v14 = vmul.f32 %v1781_v11, %v1781_v11 }
0x172e   :  { %v1785_v17 = vsel %vm163_vm6, %v1783_v14, 0.0  ;;  %v1784_v18 = vmul.f32 %v1782_v13, %v1782_v13 }
0x172f   :  { %1786 = vadd.xlane.f32.xlu0 %v1785_v17 }
0x1730   :  { %v1788_v5 = vsel %vm163_vm6, %v1784_v18, 0.0 }
0x1733   :  { %1789 = vadd.xlane.f32.xlu0 %v1788_v5 }
0x17bc   :  { %v1787_v21 = vpop.xlane.xlu0 %1786 }
0x17bd   :  { %v1791_v41 = vmul.f32 0.03125, %v1787_v21 }
0x17bf   :  { %v1793_v22 = vadd.f32 1e-12, %v1791_v41 }
0x17c0   :  { %v1790_v45 = vpop.xlane.xlu0 %1789 }
0x17c1   :  { %2529 = vrsqrt.f32 %v1793_v22  ;;  %v1792_v23 = vmul.f32 0.03125, %v1790_v45 }
0x17c3   :  { %v1794_v8 = vadd.f32 1e-12, %v1792_v23 }
0x17c5   :  { %2531 = vrsqrt.f32 %v1794_v8 }
0x17cb   :  { %v2530_v10 = vpop.eup %2529 }
0x17cc   :  { %v1797_v24 = vmul.f32 %v2530_v10, %v1781_v11 }
0x17ce   :  { %v1803_v28 = vmul.f32 %v2061_v26, %v1797_v24 }
0x17cf   :  { %v2532_v27 = vpop.eup %2531 }
0x17d0   :  { %v1798_v29 = vmul.f32 %v2532_v27, %v1782_v13  ;;  %v1809_v34 = vadd.f32 %v2062_v30, %v1803_v28 }
0x17d2   :  { %v1804_v33 = vmul.f32 %v2061_v26, %v1798_v29  ;;  %v2071_v29 = vld [vmem:[%s3077_s4 + $0x10] ss:$0 sm:$0xff] }
0x17d4   :  { %v1810_v35 = vadd.f32 %v2062_v30, %v1804_v33 }
0x17d6   :  { %v1811_v36 = vpack.c.bf16 %v1810_v35, %v1809_v34 }
0x17d8   :  { %2331 = vmatmul.mubr.msk.bf16.vlgmr.msra.gmra.mrb[52].mxu1 %vm163_vm6, %v1811_v36 }
0x18ab   :  { %v1866_v43 = vpop.f32.mrb[52].mxu1 }
0x18ac   :  { %v1867_v44 = vadd.f32 %v2063_v42, %v1866_v43  ;;  %v2332_v31 = vpop.f32.mrb[53].mxu1 }
0x18ad   :  { %v1869_v15 = vpop.f32.mrb[54].mxu1 }
0x18ae   :  { %v1875_v16 = vmul.f32 0.044715, %v1867_v44  ;;  %v1870_v46 = vadd.f32 %v2063_v42, %v1869_v15  ;;  %v2333_v47 = vpop.f32.mrb[55].mxu1  ;;  %v1873_v57 = vmul.f32 0.5, %v1867_v44 }
0x18b0   :  { %v1877_v48 = vmul.f32 %v1875_v16, %v1867_v44  ;;  %v1876_v63 = vmul.f32 0.044715, %v1870_v46  ;;  %v1874_v58 = vmul.f32 0.5, %v1870_v46 }
0x18b2   :  { %v1879_v49 = vmul.f32 %v1877_v48, %v1867_v44  ;;  %v1878_v32 = vmul.f32 %v1876_v63, %v1870_v46 }
0x18b4   :  { %v1881_v50 = vadd.f32 %v1879_v49, %v1867_v44  ;;  %v1880_v25 = vmul.f32 %v1878_v32, %v1870_v46 }
0x18b6   :  { %v1883_v51 = vmul.f32 0.7978846, %v1881_v50  ;;  %v1882_v52 = vadd.f32 %v1880_v25, %v1870_v46 }
0x18b8   :  { %2533 = vtanh.f32 %v1883_v51  ;;  %v1884_v53 = vmul.f32 0.7978846, %v1882_v52 }
0x18ba   :  { %2535 = vtanh.f32 %v1884_v53 }
0x18c2   :  { %v2534_v54 = vpop.eup %2533 }
0x18c3   :  { %v1887_v55 = vadd.f32 1.0, %v2534_v54 }
0x18c4   :  { %v2536_v56 = vpop.eup %2535 }
0x18c5   :  { %v1888_v19 = vadd.f32 1.0, %v2536_v56  ;;  %v1889_v59 = vmul.f32 %v1887_v55, %v1873_v57 }
0x18c7   :  { %v1890_v60 = vmul.f32 %v1888_v19, %v1874_v58 }
0x18c9   :  { %v1891_v61 = vpack.c.bf16 %v1890_v60, %v1889_v59 }
0x18cb   :  { %2339 = vmatmul.mubr.msk.bf16.vlgmr.msra.gmra.mrb[40].mxu0 %vm1017_vm14, %v1891_v61 }
0x199e   :  { %v1946_v0 = vpop.f32.mrb[40].mxu0 }
0x199f   :  { %v1947_v1 = vadd.f32 %v2067_v62, %v1946_v0  ;;  %v2340_v2 = vpop.f32.mrb[41].mxu0 }
0x19a0   :  { %v1949_v3 = vpop.f32.mrb[42].mxu0 }
0x19a1   :  { %v1950_v4 = vadd.f32 %v2067_v62, %v1949_v3  ;;  %v2341_v7 = vpop.f32.mrb[43].mxu0  ;;  %v1953_v9 = vadd.f32 %v1947_v1, %v1809_v34  ;;  %v2072_v34 = vld [vmem:[%s3077_s4 + $0x11] ss:$0 sm:$0xff] }
0x19a3   :  { %v1957_v11 = vsel %vm163_vm6, %v1953_v9, 0.0  ;;  %v1954_v12 = vadd.f32 %v1950_v4, %v1810_v35 }
0x19a4   :  { %1958 = vadd.xlane.f32.xlu1 %v1957_v11 }
0x19a5   :  { %v1960_v13 = vsel %vm163_vm6, %v1954_v12, 0.0 }
0x19a6   :  { %1961 = vadd.xlane.f32.xlu0 %v1960_v13 }
0x1a31   :  { %v1959_v14 = vpop.xlane.xlu1 %1958 }
0x1a32   :  { %v1963_v17 = vmul.f32 0.03125, %v1959_v14 }
0x1a33   :  { %v1962_v18 = vpop.xlane.xlu0 %1961 }
0x1a34   :  { %v1965_v5 = vsub.f32 %v1953_v9, %v1963_v17  ;;  %v1964_v6 = vmul.f32 0.03125, %v1962_v18 }
0x1a36   :  { %v1966_v20 = vsub.f32 %v1954_v12, %v1964_v6  ;;  %v1967_v21 = vmul.f32 %v1965_v5, %v1965_v5 }
0x1a38   :  { %v1969_v41 = vsel %vm163_vm6, %v1967_v21, 0.0  ;;  %v1968_v22 = vmul.f32 %v1966_v20, %v1966_v20 }
0x1a39   :  { %1970 = vadd.xlane.f32.xlu1 %v1969_v41 }
0x1a3a   :  { %v1972_v45 = vsel %vm163_vm6, %v1968_v22, 0.0 }
0x1a3b   :  { %1973 = vadd.xlane.f32.xlu0 %v1972_v45 }
0x1ac6   :  { %v1971_v23 = vpop.xlane.xlu1 %1970 }
0x1ac7   :  { %v1975_v8 = vmul.f32 0.03125, %v1971_v23 }
0x1ac8   :  { %v1974_v10 = vpop.xlane.xlu0 %1973 }
0x1ac9   :  { %v1977_v24 = vadd.f32 1e-12, %v1975_v8  ;;  %v1976_v26 = vmul.f32 0.03125, %v1974_v10 }
0x1acb   :  { %2537 = vrsqrt.f32 %v1977_v24  ;;  %v1978_v27 = vadd.f32 1e-12, %v1976_v26 }
0x1acd   :  { %2539 = vrsqrt.f32 %v1978_v27 }
0x1ad5   :  { %v2538_v28 = vpop.eup %2537 }
0x1ad6   :  { %v1981_v30 = vmul.f32 %v2538_v28, %v1965_v5 }
0x1ad7   :  { %v2540_v33 = vpop.eup %2539 }
0x1ad8   :  { %v1987_v35 = vmul.f32 %v2071_v29, %v1981_v30  ;;  %v1982_v36 = vmul.f32 %v2540_v33, %v1966_v20 }
0x1ada   :  { %v1993_v37 = vadd.f32 %v2072_v34, %v1987_v35  ;;  %v1988_v38 = vmul.f32 %v2071_v29, %v1982_v36 }
0x1adc   :  { %1995 = vst.msk [vmem:[%s3079_s6] sm:$0xff] %vm163_vm6, %v1993_v37  ;;  %v1994_v39 = vadd.f32 %v2072_v34, %v1988_v38 }
0x1ade   :  { %1996 = vst.msk [vmem:[%s3079_s6 + $0x8] sm:$0xff] %vm163_vm6, %v1994_v39 }

</bundles_post_ra>
